<compile_context>
chip_gen: v7x
topology: tpu7x:2x2x1
jax: 0.10.0
libtpu: 0.0.40
codegen_flags: <defaults>
</compile_context>

<pallas_src>
import jax
import jax.numpy as jnp
from jax import lax
from jax.experimental import pallas as pl
from jax.experimental.pallas import tpu as pltpu

N_ODE_STEPS = 8  # fixed-step RK4 substitute for adaptive odeint


def ode_rnn_kernel(t_ref, x_ref, xflat_ref, wic_ref, bic_ref,
                   wcat_ref, brnn_ref, wode_ref, bode_ref, vt_ref,
                   h0_ref, hseq_ref, h_carry):
    step = pl.program_id(1)  # time index (grid axis 1, "arbitrary")

    # ---- ic: h0 = rearrange(x,'t b c -> b (t c)') @ W_ic + b_ic  (single MXU push)
    @pl.when(step == 0)
    def _init():
        h0 = (jnp.dot(xflat_ref[...], wic_ref[...],
                      preferred_element_type=jnp.float32) + bic_ref[...])
        h0_ref[...] = h0
        h_carry[...] = h0

    h = h_carry[...]          # [Bb, Hp]  h_ode[i]
    x_i = x_ref[0]            # [Bb, C]
    t_i = t_ref[0]            # [Bb, 1]   (ode.update(t[i]))

    # hoisted: time-conditioned ODE bias, computed once per time step
    bias_i = bode_ref[...] + t_i * vt_ref[...]      # [Bb, Hp]

    # ---- rnn cell, fused into one dot:
    #   h_rnn = tanh([h, x_i] @ [W_hh; W_xh] + b_rnn)
    # (h first: its lane width Hp is 128-aligned, x_i is the trailing operand)
    xh = jnp.concatenate([h, x_i], axis=-1)         # [Bb, Hp + C]
    h_rnn = jnp.tanh(
        jnp.dot(xh, wcat_ref[...], preferred_element_type=jnp.float32)
        + brnn_ref[...])

    # ---- h_ode[i+1] = odeint(ode, h_rnn, [0, 1])[-1]   (fixed-step RK4)
    ds = jnp.float32(1.0 / N_ODE_STEPS)
    wode = wode_ref[...]

    def f(hh):
        return jnp.tanh(
            jnp.dot(hh, wode, preferred_element_type=jnp.float32) + bias_i)

    def rk4_step(_, hh):
        k1 = f(hh)
        k2 = f(hh + 0.5 * ds * k1)
        k3 = f(hh + 0.5 * ds * k2)
        k4 = f(hh + ds * k3)
        return hh + (ds / 6.0) * (k1 + 2.0 * k2 + 2.0 * k3 + k4)

    h_new = lax.fori_loop(0, N_ODE_STEPS, rk4_step, h_rnn, unroll=True)

    h_carry[...] = h_new
    hseq_ref[0] = h_new       # h_ode[i+1]


def ode_rnn_forward(t, x, params):
    T, B = t.shape
    C = x.shape[-1]
    H = params["whh"].shape[0]
    f32 = jnp.float32

    # hardware-tile padding: sublane (8) on batch, lane (128) on hidden
    B_pad = ((B + 7) // 8) * 8
    H_pad = ((H + 127) // 128) * 128
    Bb = B_pad                     # one batch block at these sizes
    nb = B_pad // Bb

    def pad2(a, r, c):
        a = a.astype(f32)
        return jnp.pad(a, ((0, r - a.shape[0]), (0, c - a.shape[1])))

    # ---- data (zero-padded rows are sliced off at the end)
    t3 = jnp.pad(t.astype(f32), ((0, 0), (0, B_pad - B)))[:, :, None]   # [T, B_pad, 1]
    x_p = jnp.pad(x.astype(f32), ((0, 0), (0, B_pad - B), (0, 0)))      # [T, B_pad, C]
    x_flat = jnp.pad(                                                   # [B_pad, T*C]
        jnp.transpose(x.astype(f32), (1, 0, 2)).reshape(B, T * C),
        ((0, B_pad - B), (0, 0)))

    # ---- weights (zero-padding keeps padded lanes exactly zero)
    wic = pad2(params["wic"].reshape(T * C, H), T * C, H_pad)           # [T*C, Hp]
    bic = pad2(params["bic"], 1, H_pad)
    whh = pad2(params["whh"], H_pad, H_pad)
    wxh = pad2(params["wxh"], C, H_pad)
    wcat = jnp.concatenate([whh, wxh], axis=0)                          # [Hp + C, Hp]
    brnn = pad2(params["brnn"], 1, H_pad)
    wode = pad2(params["wode"], H_pad, H_pad)
    bode = pad2(params["bode"], 1, H_pad)
    vt = pad2(params["vt"], 1, H_pad)

    full = lambda b, i: (0, 0)

    h0_out, hseq = pl.pallas_call(
        ode_rnn_kernel,
        out_shape=(jax.ShapeDtypeStruct((B_pad, H_pad), f32),
                   jax.ShapeDtypeStruct((T, B_pad, H_pad), f32)),
        grid=(nb, T),
        in_specs=[
            pl.BlockSpec((1, Bb, 1), lambda b, i: (i, b, 0)),     # t
            pl.BlockSpec((1, Bb, C), lambda b, i: (i, b, 0)),     # x (streamed per step)
            pl.BlockSpec((Bb, T * C), lambda b, i: (b, 0)),       # x flattened (IC)
            pl.BlockSpec((T * C, H_pad), full),                   # wic
            pl.BlockSpec((1, H_pad), full),                       # bic
            pl.BlockSpec((H_pad + C, H_pad), full),               # wcat = [whh; wxh]
            pl.BlockSpec((1, H_pad), full),                       # brnn
            pl.BlockSpec((H_pad, H_pad), full),                   # wode
            pl.BlockSpec((1, H_pad), full),                       # bode
            pl.BlockSpec((1, H_pad), full),                       # vt
        ],
        out_specs=(
            pl.BlockSpec((Bb, H_pad), lambda b, i: (b, 0)),       # h_ode[0]
            pl.BlockSpec((1, Bb, H_pad), lambda b, i: (i, b, 0)), # h_ode[1:]
        ),
        scratch_shapes=[pltpu.VMEM((Bb, H_pad), f32)],            # h_ode carry
        compiler_params=pltpu.CompilerParams(
            dimension_semantics=("parallel", "arbitrary"),
            vmem_limit_bytes=32 * 1024 * 1024),
    )(t3, x_p, x_flat, wic, bic, wcat, brnn, wode, bode, vt)

    out = jnp.concatenate([h0_out[None], hseq], axis=0)   # [T+1, B_pad, H_pad]
    return out[:, :B, :H]


def init_params(key, T, C, H):
    ks = jax.random.split(key, 8)
    s = 0.1
    return dict(
        wic=jax.random.normal(ks[0], (T, C, H), jnp.float32) * s,
        bic=jax.random.normal(ks[1], (1, H), jnp.float32) * s,
        wxh=jax.random.normal(ks[2], (C, H), jnp.float32) * s,
        whh=jax.random.normal(ks[3], (H, H), jnp.float32) * s,
        brnn=jax.random.normal(ks[4], (1, H), jnp.float32) * s,
        wode=jax.random.normal(ks[5], (H, H), jnp.float32) * s,
        bode=jax.random.normal(ks[6], (1, H), jnp.float32) * s,
        vt=jax.random.normal(ks[7], (1, H), jnp.float32) * s,
    )


def ode_rnn_ref(t, x, p):
    """Pure-JAX reference with identical semantics (for correctness check)."""
    T, B = t.shape
    ds = 1.0 / N_ODE_STEPS
    h0 = jnp.einsum("tbc,tch->bh", x, p["wic"]) + p["bic"]
    out = [h0]
    h_ode = h0
    for i in range(T):
        tb = t[i][:, None] * p["vt"]
        h_rnn = jnp.tanh(x[i] @ p["wxh"] + h_ode @ p["whh"] + p["brnn"])
        f = lambda h: jnp.tanh(h @ p["wode"] + p["bode"] + tb)
        h = h_rnn
        for _ in range(N_ODE_STEPS):
            k1 = f(h); k2 = f(h + 0.5 * ds * k1)
            k3 = f(h + 0.5 * ds * k2); k4 = f(h + ds * k3)
            h = h + (ds / 6.0) * (k1 + 2 * k2 + 2 * k3 + k4)
        h_ode = h
        out.append(h_ode)
    return jnp.stack(out, 0)


if __name__ == "__main__":
    T, B, C, H = 8, 2, 4, 32
    key = jax.random.PRNGKey(0)
    kt, kx, kp = jax.random.split(key, 3)
    t = jnp.cumsum(jax.random.uniform(kt, (T, B), jnp.float32), axis=0)  # [T, B]
    x = jax.random.normal(kx, (T, B, C), jnp.float32)                    # [T, B, C]
    params = init_params(kp, T, C, H)

    out = jax.block_until_ready(ode_rnn_forward(t, x, params))
    ref = ode_rnn_ref(t, x, params)

    assert out.shape == (T + 1, B, H), out.shape
    assert out.dtype == jnp.float32
    assert jnp.allclose(out, ref, atol=1e-4, rtol=1e-4), \
        float(jnp.max(jnp.abs(out - ref)))
    print("KERNEL_OK")
</pallas_src>

<mosaic_0001>
module attributes {stable_mosaic.version = 11 : i64} {
  func.func @ode_rnn_kernel(%arg0: i32, %arg1: i32, %arg2: memref<1x8x1xf32, #tpu.memory_space<vmem>>, %arg3: memref<1x8x4xf32, #tpu.memory_space<vmem>>, %arg4: memref<8x32xf32, #tpu.memory_space<vmem>>, %arg5: memref<32x128xf32, #tpu.memory_space<vmem>>, %arg6: memref<1x128xf32, #tpu.memory_space<vmem>>, %arg7: memref<132x128xf32, #tpu.memory_space<vmem>>, %arg8: memref<1x128xf32, #tpu.memory_space<vmem>>, %arg9: memref<128x128xf32, #tpu.memory_space<vmem>>, %arg10: memref<1x128xf32, #tpu.memory_space<vmem>>, %arg11: memref<1x128xf32, #tpu.memory_space<vmem>>, %arg12: memref<8x128xf32, #tpu.memory_space<vmem>>, %arg13: memref<1x8x128xf32, #tpu.memory_space<vmem>>, %arg14: memref<8x128xf32, #tpu.memory_space<vmem>>) attributes {dimension_semantics = [#tpu.dimension_semantics<parallel>, #tpu.dimension_semantics<arbitrary>], iteration_bounds = array<i64: 1, 8>, scalar_prefetch = 0 : i64, scratch_operands = 1 : i64, tpu.core_type = #tpu.core_type<tc>, window_params = [{transform_indices = @transform_0, window_bounds = array<i64: 1, 8, 1>}, {transform_indices = @transform_1, window_bounds = array<i64: 1, 8, 4>}, {transform_indices = @transform_2, window_bounds = array<i64: 8, 32>}, {pipeline_mode = #tpu.pipeline_mode<synchronous>, transform_indices = @transform_3, window_bounds = array<i64: 32, 128>}, {pipeline_mode = #tpu.pipeline_mode<synchronous>, transform_indices = @transform_4, window_bounds = array<i64: 1, 128>}, {pipeline_mode = #tpu.pipeline_mode<synchronous>, transform_indices = @transform_5, window_bounds = array<i64: 132, 128>}, {pipeline_mode = #tpu.pipeline_mode<synchronous>, transform_indices = @transform_6, window_bounds = array<i64: 1, 128>}, {pipeline_mode = #tpu.pipeline_mode<synchronous>, transform_indices = @transform_7, window_bounds = array<i64: 128, 128>}, {pipeline_mode = #tpu.pipeline_mode<synchronous>, transform_indices = @transform_8, window_bounds = array<i64: 1, 128>}, {pipeline_mode = #tpu.pipeline_mode<synchronous>, transform_indices = @transform_9, window_bounds = array<i64: 1, 128>}, {transform_indices = @transform_10, window_bounds = array<i64: 8, 128>}, {transform_indices = @transform_11, window_bounds = array<i64: 1, 8, 128>}]} {
    %c0_i32 = arith.constant 0 : i32
    %0 = arith.cmpi eq, %arg1, %c0_i32 : i32
    %1 = arith.extui %0 : i1 to i32
    %c0_i32_0 = arith.constant 0 : i32
    %2 = arith.cmpi ne, %1, %c0_i32_0 : i32
    scf.if %2 {
      %c0_97 = arith.constant 0 : index
      %c0_98 = arith.constant 0 : index
      %299 = vector.load %arg4[%c0_97, %c0_98] : memref<8x32xf32, #tpu.memory_space<vmem>>, vector<8x32xf32>
      %c0_99 = arith.constant 0 : index
      %c0_100 = arith.constant 0 : index
      %300 = vector.load %arg5[%c0_99, %c0_100] : memref<32x128xf32, #tpu.memory_space<vmem>>, vector<32x128xf32>
      %cst_101 = arith.constant dense<0.000000e+00> : vector<8x128xf32>
      %301 = tpu.matmul %299, %300, %cst_101 {dimension_numbers = #tpu.dot_dimension_numbers<[1], [0], [0], [1], [0, 0, 1, 1], [], []>} : vector<8x32xf32>, vector<32x128xf32>, vector<8x128xf32> -> vector<8x128xf32>
      %c0_102 = arith.constant 0 : index
      %c0_103 = arith.constant 0 : index
      %302 = vector.load %arg6[%c0_102, %c0_103] : memref<1x128xf32, #tpu.memory_space<vmem>>, vector<1x128xf32>
      %303 = vector.broadcast %302 : vector<1x128xf32> to vector<8x128xf32>
      %304 = arith.addf %301, %303 : vector<8x128xf32>
      %c0_104 = arith.constant 0 : index
      %c0_105 = arith.constant 0 : index
      %305 = vector.load %arg12[%c0_104, %c0_105] : memref<8x128xf32, #tpu.memory_space<vmem>>, vector<8x128xf32>
      tpu.vector_store %arg12[%c0_104, %c0_105], %304 {strides = array<i32>} : memref<8x128xf32, #tpu.memory_space<vmem>>, vector<8x128xf32>,
      %c0_106 = arith.constant 0 : index
      %c0_107 = arith.constant 0 : index
      %306 = vector.load %arg14[%c0_106, %c0_107] : memref<8x128xf32, #tpu.memory_space<vmem>>, vector<8x128xf32>
      tpu.vector_store %arg14[%c0_106, %c0_107], %304 {strides = array<i32>} : memref<8x128xf32, #tpu.memory_space<vmem>>, vector<8x128xf32>,
    } else {
    }
    %c0 = arith.constant 0 : index
    %c0_1 = arith.constant 0 : index
    %3 = vector.load %arg14[%c0, %c0_1] : memref<8x128xf32, #tpu.memory_space<vmem>>, vector<8x128xf32>
    %c0_2 = arith.constant 0 : index
    %c0_3 = arith.constant 0 : index
    %c0_4 = arith.constant 0 : index
    %4 = vector.load %arg3[%c0_2, %c0_3, %c0_4] : memref<1x8x4xf32, #tpu.memory_space<vmem>>, vector<1x8x4xf32>
    %5 = vector.shape_cast %4 : vector<1x8x4xf32> to vector<8x4xf32>
    %c0_5 = arith.constant 0 : index
    %c0_6 = arith.constant 0 : index
    %c0_7 = arith.constant 0 : index
    %6 = vector.load %arg2[%c0_5, %c0_6, %c0_7] : memref<1x8x1xf32, #tpu.memory_space<vmem>>, vector<1x8x1xf32>
    %7 = vector.shape_cast %6 : vector<1x8x1xf32> to vector<8x1xf32>
    %c0_8 = arith.constant 0 : index
    %c0_9 = arith.constant 0 : index
    %8 = vector.load %arg10[%c0_8, %c0_9] : memref<1x128xf32, #tpu.memory_space<vmem>>, vector<1x128xf32>
    %c0_10 = arith.constant 0 : index
    %c0_11 = arith.constant 0 : index
    %9 = vector.load %arg11[%c0_10, %c0_11] : memref<1x128xf32, #tpu.memory_space<vmem>>, vector<1x128xf32>
    %10 = vector.broadcast %7 : vector<8x1xf32> to vector<8x128xf32>
    %11 = vector.broadcast %9 : vector<1x128xf32> to vector<8x128xf32>
    %12 = arith.mulf %10, %11 : vector<8x128xf32>
    %13 = vector.broadcast %8 : vector<1x128xf32> to vector<8x128xf32>
    %14 = arith.addf %13, %12 : vector<8x128xf32>
    %15 = tpu.concatenate %3, %5 in 1 : vector<8x128xf32>, vector<8x4xf32> -> vector<8x132xf32>
    %c0_12 = arith.constant 0 : index
    %c0_13 = arith.constant 0 : index
    %16 = vector.load %arg7[%c0_12, %c0_13] : memref<132x128xf32, #tpu.memory_space<vmem>>, vector<132x128xf32>
    %cst = arith.constant dense<0.000000e+00> : vector<8x128xf32>
    %17 = tpu.matmul %15, %16, %cst {dimension_numbers = #tpu.dot_dimension_numbers<[1], [0], [0], [1], [0, 0, 1, 1], [], []>} : vector<8x132xf32>, vector<132x128xf32>, vector<8x128xf32> -> vector<8x128xf32>
    %c0_14 = arith.constant 0 : index
    %c0_15 = arith.constant 0 : index
    %18 = vector.load %arg8[%c0_14, %c0_15] : memref<1x128xf32, #tpu.memory_space<vmem>>, vector<1x128xf32>
    %19 = vector.broadcast %18 : vector<1x128xf32> to vector<8x128xf32>
    %20 = arith.addf %17, %19 : vector<8x128xf32>
    %21 = math.tanh %20 : vector<8x128xf32>
    %c0_16 = arith.constant 0 : index
    %c0_17 = arith.constant 0 : index
    %22 = vector.load %arg9[%c0_16, %c0_17] : memref<128x128xf32, #tpu.memory_space<vmem>>, vector<128x128xf32>
    %cst_18 = arith.constant 1.250000e-01 : f32
    %c0_i32_19 = arith.constant 0 : i32
    %cst_20 = arith.constant dense<0.000000e+00> : vector<8x128xf32>
    %23 = tpu.matmul %21, %22, %cst_20 {dimension_numbers = #tpu.dot_dimension_numbers<[1], [0], [0], [1], [0, 0, 1, 1], [], []>} : vector<8x128xf32>, vector<128x128xf32>, vector<8x128xf32> -> vector<8x128xf32>
    %24 = arith.addf %23, %14 : vector<8x128xf32>
    %25 = math.tanh %24 : vector<8x128xf32>
    %cst_21 = arith.constant 5.000000e-01 : f32
    %26 = arith.mulf %cst_21, %cst_18 : f32
    %27 = vector.broadcast %26 : f32 to vector<8x128xf32>
    %28 = arith.mulf %27, %25 : vector<8x128xf32>
    %29 = arith.addf %21, %28 : vector<8x128xf32>
    %cst_22 = arith.constant dense<0.000000e+00> : vector<8x128xf32>
    %30 = tpu.matmul %29, %22, %cst_22 {dimension_numbers = #tpu.dot_dimension_numbers<[1], [0], [0], [1], [0, 0, 1, 1], [], []>} : vector<8x128xf32>, vector<128x128xf32>, vector<8x128xf32> -> vector<8x128xf32>
    %31 = arith.addf %30, %14 : vector<8x128xf32>
    %32 = math.tanh %31 : vector<8x128xf32>
    %cst_23 = arith.constant 5.000000e-01 : f32
    %33 = arith.mulf %cst_23, %cst_18 : f32
    %34 = vector.broadcast %33 : f32 to vector<8x128xf32>
    %35 = arith.mulf %34, %32 : vector<8x128xf32>
    %36 = arith.addf %21, %35 : vector<8x128xf32>
    %cst_24 = arith.constant dense<0.000000e+00> : vector<8x128xf32>
    %37 = tpu.matmul %36, %22, %cst_24 {dimension_numbers = #tpu.dot_dimension_numbers<[1], [0], [0], [1], [0, 0, 1, 1], [], []>} : vector<8x128xf32>, vector<128x128xf32>, vector<8x128xf32> -> vector<8x128xf32>
    %38 = arith.addf %37, %14 : vector<8x128xf32>
    %39 = math.tanh %38 : vector<8x128xf32>
    %40 = vector.broadcast %cst_18 : f32 to vector<8x128xf32>
    %41 = arith.mulf %40, %39 : vector<8x128xf32>
    %42 = arith.addf %21, %41 : vector<8x128xf32>
    %cst_25 = arith.constant dense<0.000000e+00> : vector<8x128xf32>
    %43 = tpu.matmul %42, %22, %cst_25 {dimension_numbers = #tpu.dot_dimension_numbers<[1], [0], [0], [1], [0, 0, 1, 1], [], []>} : vector<8x128xf32>, vector<128x128xf32>, vector<8x128xf32> -> vector<8x128xf32>
    %44 = arith.addf %43, %14 : vector<8x128xf32>
    %45 = math.tanh %44 : vector<8x128xf32>
    %cst_26 = arith.constant 6.000000e+00 : f32
    %46 = arith.divf %cst_18, %cst_26 : f32
    %cst_27 = arith.constant 2.000000e+00 : f32
    %47 = vector.broadcast %cst_27 : f32 to vector<8x128xf32>
    %48 = arith.mulf %47, %32 : vector<8x128xf32>
    %49 = arith.addf %25, %48 : vector<8x128xf32>
    %cst_28 = arith.constant 2.000000e+00 : f32
    %50 = vector.broadcast %cst_28 : f32 to vector<8x128xf32>
    %51 = arith.mulf %50, %39 : vector<8x128xf32>
    %52 = arith.addf %49, %51 : vector<8x128xf32>
    %53 = arith.addf %52, %45 : vector<8x128xf32>
    %54 = vector.broadcast %46 : f32 to vector<8x128xf32>
    %55 = arith.mulf %54, %53 : vector<8x128xf32>
    %56 = arith.addf %21, %55 : vector<8x128xf32>
    %c1_i32 = arith.constant 1 : i32
    %cst_29 = arith.constant dense<0.000000e+00> : vector<8x128xf32>
    %57 = tpu.matmul %56, %22, %cst_29 {dimension_numbers = #tpu.dot_dimension_numbers<[1], [0], [0], [1], [0, 0, 1, 1], [], []>} : vector<8x128xf32>, vector<128x128xf32>, vector<8x128xf32> -> vector<8x128xf32>
    %58 = arith.addf %57, %14 : vector<8x128xf32>
    %59 = math.tanh %58 : vector<8x128xf32>
    %cst_30 = arith.constant 5.000000e-01 : f32
    %60 = arith.mulf %cst_30, %cst_18 : f32
    %61 = vector.broadcast %60 : f32 to vector<8x128xf32>
    %62 = arith.mulf %61, %59 : vector<8x128xf32>
    %63 = arith.addf %56, %62 : vector<8x128xf32>
    %cst_31 = arith.constant dense<0.000000e+00> : vector<8x128xf32>
    %64 = tpu.matmul %63, %22, %cst_31 {dimension_numbers = #tpu.dot_dimension_numbers<[1], [0], [0], [1], [0, 0, 1, 1], [], []>} : vector<8x128xf32>, vector<128x128xf32>, vector<8x128xf32> -> vector<8x128xf32>
    %65 = arith.addf %64, %14 : vector<8x128xf32>
    %66 = math.tanh %65 : vector<8x128xf32>
    %cst_32 = arith.constant 5.000000e-01 : f32
    %67 = arith.mulf %cst_32, %cst_18 : f32
    %68 = vector.broadcast %67 : f32 to vector<8x128xf32>
    %69 = arith.mulf %68, %66 : vector<8x128xf32>
    %70 = arith.addf %56, %69 : vector<8x128xf32>
    %cst_33 = arith.constant dense<0.000000e+00> : vector<8x128xf32>
    %71 = tpu.matmul %70, %22, %cst_33 {dimension_numbers = #tpu.dot_dimension_numbers<[1], [0], [0], [1], [0, 0, 1, 1], [], []>} : vector<8x128xf32>, vector<128x128xf32>, vector<8x128xf32> -> vector<8x128xf32>
    %72 = arith.addf %71, %14 : vector<8x128xf32>
    %73 = math.tanh %72 : vector<8x128xf32>
    %74 = vector.broadcast %cst_18 : f32 to vector<8x128xf32>
    %75 = arith.mulf %74, %73 : vector<8x128xf32>
    %76 = arith.addf %56, %75 : vector<8x128xf32>
    %cst_34 = arith.constant dense<0.000000e+00> : vector<8x128xf32>
    %77 = tpu.matmul %76, %22, %cst_34 {dimension_numbers = #tpu.dot_dimension_numbers<[1], [0], [0], [1], [0, 0, 1, 1], [], []>} : vector<8x128xf32>, vector<128x128xf32>, vector<8x128xf32> -> vector<8x128xf32>
    %78 = arith.addf %77, %14 : vector<8x128xf32>
    %79 = math.tanh %78 : vector<8x128xf32>
    %cst_35 = arith.constant 6.000000e+00 : f32
    %80 = arith.divf %cst_18, %cst_35 : f32
    %cst_36 = arith.constant 2.000000e+00 : f32
    %81 = vector.broadcast %cst_36 : f32 to vector<8x128xf32>
    %82 = arith.mulf %81, %66 : vector<8x128xf32>
    %83 = arith.addf %59, %82 : vector<8x128xf32>
    %cst_37 = arith.constant 2.000000e+00 : f32
    %84 = vector.broadcast %cst_37 : f32 to vector<8x128xf32>
    %85 = arith.mulf %84, %73 : vector<8x128xf32>
    %86 = arith.addf %83, %85 : vector<8x128xf32>
    %87 = arith.addf %86, %79 : vector<8x128xf32>
    %88 = vector.broadcast %80 : f32 to vector<8x128xf32>
    %89 = arith.mulf %88, %87 : vector<8x128xf32>
    %90 = arith.addf %56, %89 : vector<8x128xf32>
    %c2_i32 = arith.constant 2 : i32
    %cst_38 = arith.constant dense<0.000000e+00> : vector<8x128xf32>
    %91 = tpu.matmul %90, %22, %cst_38 {dimension_numbers = #tpu.dot_dimension_numbers<[1], [0], [0], [1], [0, 0, 1, 1], [], []>} : vector<8x128xf32>, vector<128x128xf32>, vector<8x128xf32> -> vector<8x128xf32>
    %92 = arith.addf %91, %14 : vector<8x128xf32>
    %93 = math.tanh %92 : vector<8x128xf32>
    %cst_39 = arith.constant 5.000000e-01 : f32
    %94 = arith.mulf %cst_39, %cst_18 : f32
    %95 = vector.broadcast %94 : f32 to vector<8x128xf32>
    %96 = arith.mulf %95, %93 : vector<8x128xf32>
    %97 = arith.addf %90, %96 : vector<8x128xf32>
    %cst_40 = arith.constant dense<0.000000e+00> : vector<8x128xf32>
    %98 = tpu.matmul %97, %22, %cst_40 {dimension_numbers = #tpu.dot_dimension_numbers<[1], [0], [0], [1], [0, 0, 1, 1], [], []>} : vector<8x128xf32>, vector<128x128xf32>, vector<8x128xf32> -> vector<8x128xf32>
    %99 = arith.addf %98, %14 : vector<8x128xf32>
    %100 = math.tanh %99 : vector<8x128xf32>
    %cst_41 = arith.constant 5.000000e-01 : f32
    %101 = arith.mulf %cst_41, %cst_18 : f32
    %102 = vector.broadcast %101 : f32 to vector<8x128xf32>
    %103 = arith.mulf %102, %100 : vector<8x128xf32>
    %104 = arith.addf %90, %103 : vector<8x128xf32>
    %cst_42 = arith.constant dense<0.000000e+00> : vector<8x128xf32>
    %105 = tpu.matmul %104, %22, %cst_42 {dimension_numbers = #tpu.dot_dimension_numbers<[1], [0], [0], [1], [0, 0, 1, 1], [], []>} : vector<8x128xf32>, vector<128x128xf32>, vector<8x128xf32> -> vector<8x128xf32>
    %106 = arith.addf %105, %14 : vector<8x128xf32>
    %107 = math.tanh %106 : vector<8x128xf32>
    %108 = vector.broadcast %cst_18 : f32 to vector<8x128xf32>
    %109 = arith.mulf %108, %107 : vector<8x128xf32>
    %110 = arith.addf %90, %109 : vector<8x128xf32>
    %cst_43 = arith.constant dense<0.000000e+00> : vector<8x128xf32>
    %111 = tpu.matmul %110, %22, %cst_43 {dimension_numbers = #tpu.dot_dimension_numbers<[1], [0], [0], [1], [0, 0, 1, 1], [], []>} : vector<8x128xf32>, vector<128x128xf32>, vector<8x128xf32> -> vector<8x128xf32>
    %112 = arith.addf %111, %14 : vector<8x128xf32>
    %113 = math.tanh %112 : vector<8x128xf32>
    %cst_44 = arith.constant 6.000000e+00 : f32
    %114 = arith.divf %cst_18, %cst_44 : f32
    %cst_45 = arith.constant 2.000000e+00 : f32
    %115 = vector.broadcast %cst_45 : f32 to vector<8x128xf32>
    %116 = arith.mulf %115, %100 : vector<8x128xf32>
    %117 = arith.addf %93, %116 : vector<8x128xf32>
    %cst_46 = arith.constant 2.000000e+00 : f32
    %118 = vector.broadcast %cst_46 : f32 to vector<8x128xf32>
    %119 = arith.mulf %118, %107 : vector<8x128xf32>
    %120 = arith.addf %117, %119 : vector<8x128xf32>
    %121 = arith.addf %120, %113 : vector<8x128xf32>
    %122 = vector.broadcast %114 : f32 to vector<8x128xf32>
    %123 = arith.mulf %122, %121 : vector<8x128xf32>
    %124 = arith.addf %90, %123 : vector<8x128xf32>
    %c3_i32 = arith.constant 3 : i32
    %cst_47 = arith.constant dense<0.000000e+00> : vector<8x128xf32>
    %125 = tpu.matmul %124, %22, %cst_47 {dimension_numbers = #tpu.dot_dimension_numbers<[1], [0], [0], [1], [0, 0, 1, 1], [], []>} : vector<8x128xf32>, vector<128x128xf32>, vector<8x128xf32> -> vector<8x128xf32>
    %126 = arith.addf %125, %14 : vector<8x128xf32>
    %127 = math.tanh %126 : vector<8x128xf32>
    %cst_48 = arith.constant 5.000000e-01 : f32
    %128 = arith.mulf %cst_48, %cst_18 : f32
    %129 = vector.broadcast %128 : f32 to vector<8x128xf32>
    %130 = arith.mulf %129, %127 : vector<8x128xf32>
    %131 = arith.addf %124, %130 : vector<8x128xf32>
    %cst_49 = arith.constant dense<0.000000e+00> : vector<8x128xf32>
    %132 = tpu.matmul %131, %22, %cst_49 {dimension_numbers = #tpu.dot_dimension_numbers<[1], [0], [0], [1], [0, 0, 1, 1], [], []>} : vector<8x128xf32>, vector<128x128xf32>, vector<8x128xf32> -> vector<8x128xf32>
    %133 = arith.addf %132, %14 : vector<8x128xf32>
    %134 = math.tanh %133 : vector<8x128xf32>
    %cst_50 = arith.constant 5.000000e-01 : f32
    %135 = arith.mulf %cst_50, %cst_18 : f32
    %136 = vector.broadcast %135 : f32 to vector<8x128xf32>
    %137 = arith.mulf %136, %134 : vector<8x128xf32>
    %138 = arith.addf %124, %137 : vector<8x128xf32>
    %cst_51 = arith.constant dense<0.000000e+00> : vector<8x128xf32>
    %139 = tpu.matmul %138, %22, %cst_51 {dimension_numbers = #tpu.dot_dimension_numbers<[1], [0], [0], [1], [0, 0, 1, 1], [], []>} : vector<8x128xf32>, vector<128x128xf32>, vector<8x128xf32> -> vector<8x128xf32>
    %140 = arith.addf %139, %14 : vector<8x128xf32>
    %141 = math.tanh %140 : vector<8x128xf32>
    %142 = vector.broadcast %cst_18 : f32 to vector<8x128xf32>
    %143 = arith.mulf %142, %141 : vector<8x128xf32>
    %144 = arith.addf %124, %143 : vector<8x128xf32>
    %cst_52 = arith.constant dense<0.000000e+00> : vector<8x128xf32>
    %145 = tpu.matmul %144, %22, %cst_52 {dimension_numbers = #tpu.dot_dimension_numbers<[1], [0], [0], [1], [0, 0, 1, 1], [], []>} : vector<8x128xf32>, vector<128x128xf32>, vector<8x128xf32> -> vector<8x128xf32>
    %146 = arith.addf %145, %14 : vector<8x128xf32>
    %147 = math.tanh %146 : vector<8x128xf32>
    %cst_53 = arith.constant 6.000000e+00 : f32
    %148 = arith.divf %cst_18, %cst_53 : f32
    %cst_54 = arith.constant 2.000000e+00 : f32
    %149 = vector.broadcast %cst_54 : f32 to vector<8x128xf32>
    %150 = arith.mulf %149, %134 : vector<8x128xf32>
    %151 = arith.addf %127, %150 : vector<8x128xf32>
    %cst_55 = arith.constant 2.000000e+00 : f32
    %152 = vector.broadcast %cst_55 : f32 to vector<8x128xf32>
    %153 = arith.mulf %152, %141 : vector<8x128xf32>
    %154 = arith.addf %151, %153 : vector<8x128xf32>
    %155 = arith.addf %154, %147 : vector<8x128xf32>
    %156 = vector.broadcast %148 : f32 to vector<8x128xf32>
    %157 = arith.mulf %156, %155 : vector<8x128xf32>
    %158 = arith.addf %124, %157 : vector<8x128xf32>
    %c4_i32 = arith.constant 4 : i32
    %cst_56 = arith.constant dense<0.000000e+00> : vector<8x128xf32>
    %159 = tpu.matmul %158, %22, %cst_56 {dimension_numbers = #tpu.dot_dimension_numbers<[1], [0], [0], [1], [0, 0, 1, 1], [], []>} : vector<8x128xf32>, vector<128x128xf32>, vector<8x128xf32> -> vector<8x128xf32>
    %160 = arith.addf %159, %14 : vector<8x128xf32>
    %161 = math.tanh %160 : vector<8x128xf32>
    %cst_57 = arith.constant 5.000000e-01 : f32
    %162 = arith.mulf %cst_57, %cst_18 : f32
    %163 = vector.broadcast %162 : f32 to vector<8x128xf32>
    %164 = arith.mulf %163, %161 : vector<8x128xf32>
    %165 = arith.addf %158, %164 : vector<8x128xf32>
    %cst_58 = arith.constant dense<0.000000e+00> : vector<8x128xf32>
    %166 = tpu.matmul %165, %22, %cst_58 {dimension_numbers = #tpu.dot_dimension_numbers<[1], [0], [0], [1], [0, 0, 1, 1], [], []>} : vector<8x128xf32>, vector<128x128xf32>, vector<8x128xf32> -> vector<8x128xf32>
    %167 = arith.addf %166, %14 : vector<8x128xf32>
    %168 = math.tanh %167 : vector<8x128xf32>
    %cst_59 = arith.constant 5.000000e-01 : f32
    %169 = arith.mulf %cst_59, %cst_18 : f32
    %170 = vector.broadcast %169 : f32 to vector<8x128xf32>
    %171 = arith.mulf %170, %168 : vector<8x128xf32>
    %172 = arith.addf %158, %171 : vector<8x128xf32>
    %cst_60 = arith.constant dense<0.000000e+00> : vector<8x128xf32>
    %173 = tpu.matmul %172, %22, %cst_60 {dimension_numbers = #tpu.dot_dimension_numbers<[1], [0], [0], [1], [0, 0, 1, 1], [], []>} : vector<8x128xf32>, vector<128x128xf32>, vector<8x128xf32> -> vector<8x128xf32>
    %174 = arith.addf %173, %14 : vector<8x128xf32>
    %175 = math.tanh %174 : vector<8x128xf32>
    %176 = vector.broadcast %cst_18 : f32 to vector<8x128xf32>
    %177 = arith.mulf %176, %175 : vector<8x128xf32>
    %178 = arith.addf %158, %177 : vector<8x128xf32>
    %cst_61 = arith.constant dense<0.000000e+00> : vector<8x128xf32>
    %179 = tpu.matmul %178, %22, %cst_61 {dimension_numbers = #tpu.dot_dimension_numbers<[1], [0], [0], [1], [0, 0, 1, 1], [], []>} : vector<8x128xf32>, vector<128x128xf32>, vector<8x128xf32> -> vector<8x128xf32>
    %180 = arith.addf %179, %14 : vector<8x128xf32>
    %181 = math.tanh %180 : vector<8x128xf32>
    %cst_62 = arith.constant 6.000000e+00 : f32
    %182 = arith.divf %cst_18, %cst_62 : f32
    %cst_63 = arith.constant 2.000000e+00 : f32
    %183 = vector.broadcast %cst_63 : f32 to vector<8x128xf32>
    %184 = arith.mulf %183, %168 : vector<8x128xf32>
    %185 = arith.addf %161, %184 : vector<8x128xf32>
    %cst_64 = arith.constant 2.000000e+00 : f32
    %186 = vector.broadcast %cst_64 : f32 to vector<8x128xf32>
    %187 = arith.mulf %186, %175 : vector<8x128xf32>
    %188 = arith.addf %185, %187 : vector<8x128xf32>
    %189 = arith.addf %188, %181 : vector<8x128xf32>
    %190 = vector.broadcast %182 : f32 to vector<8x128xf32>
    %191 = arith.mulf %190, %189 : vector<8x128xf32>
    %192 = arith.addf %158, %191 : vector<8x128xf32>
    %c5_i32 = arith.constant 5 : i32
    %cst_65 = arith.constant dense<0.000000e+00> : vector<8x128xf32>
    %193 = tpu.matmul %192, %22, %cst_65 {dimension_numbers = #tpu.dot_dimension_numbers<[1], [0], [0], [1], [0, 0, 1, 1], [], []>} : vector<8x128xf32>, vector<128x128xf32>, vector<8x128xf32> -> vector<8x128xf32>
    %194 = arith.addf %193, %14 : vector<8x128xf32>
    %195 = math.tanh %194 : vector<8x128xf32>
    %cst_66 = arith.constant 5.000000e-01 : f32
    %196 = arith.mulf %cst_66, %cst_18 : f32
    %197 = vector.broadcast %196 : f32 to vector<8x128xf32>
    %198 = arith.mulf %197, %195 : vector<8x128xf32>
    %199 = arith.addf %192, %198 : vector<8x128xf32>
    %cst_67 = arith.constant dense<0.000000e+00> : vector<8x128xf32>
    %200 = tpu.matmul %199, %22, %cst_67 {dimension_numbers = #tpu.dot_dimension_numbers<[1], [0], [0], [1], [0, 0, 1, 1], [], []>} : vector<8x128xf32>, vector<128x128xf32>, vector<8x128xf32> -> vector<8x128xf32>
    %201 = arith.addf %200, %14 : vector<8x128xf32>
    %202 = math.tanh %201 : vector<8x128xf32>
    %cst_68 = arith.constant 5.000000e-01 : f32
    %203 = arith.mulf %cst_68, %cst_18 : f32
    %204 = vector.broadcast %203 : f32 to vector<8x128xf32>
    %205 = arith.mulf %204, %202 : vector<8x128xf32>
    %206 = arith.addf %192, %205 : vector<8x128xf32>
    %cst_69 = arith.constant dense<0.000000e+00> : vector<8x128xf32>
    %207 = tpu.matmul %206, %22, %cst_69 {dimension_numbers = #tpu.dot_dimension_numbers<[1], [0], [0], [1], [0, 0, 1, 1], [], []>} : vector<8x128xf32>, vector<128x128xf32>, vector<8x128xf32> -> vector<8x128xf32>
    %208 = arith.addf %207, %14 : vector<8x128xf32>
    %209 = math.tanh %208 : vector<8x128xf32>
    %210 = vector.broadcast %cst_18 : f32 to vector<8x128xf32>
    %211 = arith.mulf %210, %209 : vector<8x128xf32>
    %212 = arith.addf %192, %211 : vector<8x128xf32>
    %cst_70 = arith.constant dense<0.000000e+00> : vector<8x128xf32>
    %213 = tpu.matmul %212, %22, %cst_70 {dimension_numbers = #tpu.dot_dimension_numbers<[1], [0], [0], [1], [0, 0, 1, 1], [], []>} : vector<8x128xf32>, vector<128x128xf32>, vector<8x128xf32> -> vector<8x128xf32>
    %214 = arith.addf %213, %14 : vector<8x128xf32>
    %215 = math.tanh %214 : vector<8x128xf32>
    %cst_71 = arith.constant 6.000000e+00 : f32
    %216 = arith.divf %cst_18, %cst_71 : f32
    %cst_72 = arith.constant 2.000000e+00 : f32
    %217 = vector.broadcast %cst_72 : f32 to vector<8x128xf32>
    %218 = arith.mulf %217, %202 : vector<8x128xf32>
    %219 = arith.addf %195, %218 : vector<8x128xf32>
    %cst_73 = arith.constant 2.000000e+00 : f32
    %220 = vector.broadcast %cst_73 : f32 to vector<8x128xf32>
    %221 = arith.mulf %220, %209 : vector<8x128xf32>
    %222 = arith.addf %219, %221 : vector<8x128xf32>
    %223 = arith.addf %222, %215 : vector<8x128xf32>
    %224 = vector.broadcast %216 : f32 to vector<8x128xf32>
    %225 = arith.mulf %224, %223 : vector<8x128xf32>
    %226 = arith.addf %192, %225 : vector<8x128xf32>
    %c6_i32 = arith.constant 6 : i32
    %cst_74 = arith.constant dense<0.000000e+00> : vector<8x128xf32>
    %227 = tpu.matmul %226, %22, %cst_74 {dimension_numbers = #tpu.dot_dimension_numbers<[1], [0], [0], [1], [0, 0, 1, 1], [], []>} : vector<8x128xf32>, vector<128x128xf32>, vector<8x128xf32> -> vector<8x128xf32>
    %228 = arith.addf %227, %14 : vector<8x128xf32>
    %229 = math.tanh %228 : vector<8x128xf32>
    %cst_75 = arith.constant 5.000000e-01 : f32
    %230 = arith.mulf %cst_75, %cst_18 : f32
    %231 = vector.broadcast %230 : f32 to vector<8x128xf32>
    %232 = arith.mulf %231, %229 : vector<8x128xf32>
    %233 = arith.addf %226, %232 : vector<8x128xf32>
    %cst_76 = arith.constant dense<0.000000e+00> : vector<8x128xf32>
    %234 = tpu.matmul %233, %22, %cst_76 {dimension_numbers = #tpu.dot_dimension_numbers<[1], [0], [0], [1], [0, 0, 1, 1], [], []>} : vector<8x128xf32>, vector<128x128xf32>, vector<8x128xf32> -> vector<8x128xf32>
    %235 = arith.addf %234, %14 : vector<8x128xf32>
    %236 = math.tanh %235 : vector<8x128xf32>
    %cst_77 = arith.constant 5.000000e-01 : f32
    %237 = arith.mulf %cst_77, %cst_18 : f32
    %238 = vector.broadcast %237 : f32 to vector<8x128xf32>
    %239 = arith.mulf %238, %236 : vector<8x128xf32>
    %240 = arith.addf %226, %239 : vector<8x128xf32>
    %cst_78 = arith.constant dense<0.000000e+00> : vector<8x128xf32>
    %241 = tpu.matmul %240, %22, %cst_78 {dimension_numbers = #tpu.dot_dimension_numbers<[1], [0], [0], [1], [0, 0, 1, 1], [], []>} : vector<8x128xf32>, vector<128x128xf32>, vector<8x128xf32> -> vector<8x128xf32>
    %242 = arith.addf %241, %14 : vector<8x128xf32>
    %243 = math.tanh %242 : vector<8x128xf32>
    %244 = vector.broadcast %cst_18 : f32 to vector<8x128xf32>
    %245 = arith.mulf %244, %243 : vector<8x128xf32>
    %246 = arith.addf %226, %245 : vector<8x128xf32>
    %cst_79 = arith.constant dense<0.000000e+00> : vector<8x128xf32>
    %247 = tpu.matmul %246, %22, %cst_79 {dimension_numbers = #tpu.dot_dimension_numbers<[1], [0], [0], [1], [0, 0, 1, 1], [], []>} : vector<8x128xf32>, vector<128x128xf32>, vector<8x128xf32> -> vector<8x128xf32>
    %248 = arith.addf %247, %14 : vector<8x128xf32>
    %249 = math.tanh %248 : vector<8x128xf32>
    %cst_80 = arith.constant 6.000000e+00 : f32
    %250 = arith.divf %cst_18, %cst_80 : f32
    %cst_81 = arith.constant 2.000000e+00 : f32
    %251 = vector.broadcast %cst_81 : f32 to vector<8x128xf32>
    %252 = arith.mulf %251, %236 : vector<8x128xf32>
    %253 = arith.addf %229, %252 : vector<8x128xf32>
    %cst_82 = arith.constant 2.000000e+00 : f32
    %254 = vector.broadcast %cst_82 : f32 to vector<8x128xf32>
    %255 = arith.mulf %254, %243 : vector<8x128xf32>
    %256 = arith.addf %253, %255 : vector<8x128xf32>
    %257 = arith.addf %256, %249 : vector<8x128xf32>
    %258 = vector.broadcast %250 : f32 to vector<8x128xf32>
    %259 = arith.mulf %258, %257 : vector<8x128xf32>
    %260 = arith.addf %226, %259 : vector<8x128xf32>
    %c7_i32 = arith.constant 7 : i32
    %cst_83 = arith.constant dense<0.000000e+00> : vector<8x128xf32>
    %261 = tpu.matmul %260, %22, %cst_83 {dimension_numbers = #tpu.dot_dimension_numbers<[1], [0], [0], [1], [0, 0, 1, 1], [], []>} : vector<8x128xf32>, vector<128x128xf32>, vector<8x128xf32> -> vector<8x128xf32>
    %262 = arith.addf %261, %14 : vector<8x128xf32>
    %263 = math.tanh %262 : vector<8x128xf32>
    %cst_84 = arith.constant 5.000000e-01 : f32
    %264 = arith.mulf %cst_84, %cst_18 : f32
    %265 = vector.broadcast %264 : f32 to vector<8x128xf32>
    %266 = arith.mulf %265, %263 : vector<8x128xf32>
    %267 = arith.addf %260, %266 : vector<8x128xf32>
    %cst_85 = arith.constant dense<0.000000e+00> : vector<8x128xf32>
    %268 = tpu.matmul %267, %22, %cst_85 {dimension_numbers = #tpu.dot_dimension_numbers<[1], [0], [0], [1], [0, 0, 1, 1], [], []>} : vector<8x128xf32>, vector<128x128xf32>, vector<8x128xf32> -> vector<8x128xf32>
    %269 = arith.addf %268, %14 : vector<8x128xf32>
    %270 = math.tanh %269 : vector<8x128xf32>
    %cst_86 = arith.constant 5.000000e-01 : f32
    %271 = arith.mulf %cst_86, %cst_18 : f32
    %272 = vector.broadcast %271 : f32 to vector<8x128xf32>
    %273 = arith.mulf %272, %270 : vector<8x128xf32>
    %274 = arith.addf %260, %273 : vector<8x128xf32>
    %cst_87 = arith.constant dense<0.000000e+00> : vector<8x128xf32>
    %275 = tpu.matmul %274, %22, %cst_87 {dimension_numbers = #tpu.dot_dimension_numbers<[1], [0], [0], [1], [0, 0, 1, 1], [], []>} : vector<8x128xf32>, vector<128x128xf32>, vector<8x128xf32> -> vector<8x128xf32>
    %276 = arith.addf %275, %14 : vector<8x128xf32>
    %277 = math.tanh %276 : vector<8x128xf32>
    %278 = vector.broadcast %cst_18 : f32 to vector<8x128xf32>
    %279 = arith.mulf %278, %277 : vector<8x128xf32>
    %280 = arith.addf %260, %279 : vector<8x128xf32>
    %cst_88 = arith.constant dense<0.000000e+00> : vector<8x128xf32>
    %281 = tpu.matmul %280, %22, %cst_88 {dimension_numbers = #tpu.dot_dimension_numbers<[1], [0], [0], [1], [0, 0, 1, 1], [], []>} : vector<8x128xf32>, vector<128x128xf32>, vector<8x128xf32> -> vector<8x128xf32>
    %282 = arith.addf %281, %14 : vector<8x128xf32>
    %283 = math.tanh %282 : vector<8x128xf32>
    %cst_89 = arith.constant 6.000000e+00 : f32
    %284 = arith.divf %cst_18, %cst_89 : f32
    %cst_90 = arith.constant 2.000000e+00 : f32
    %285 = vector.broadcast %cst_90 : f32 to vector<8x128xf32>
    %286 = arith.mulf %285, %270 : vector<8x128xf32>
    %287 = arith.addf %263, %286 : vector<8x128xf32>
    %cst_91 = arith.constant 2.000000e+00 : f32
    %288 = vector.broadcast %cst_91 : f32 to vector<8x128xf32>
    %289 = arith.mulf %288, %277 : vector<8x128xf32>
    %290 = arith.addf %287, %289 : vector<8x128xf32>
    %291 = arith.addf %290, %283 : vector<8x128xf32>
    %292 = vector.broadcast %284 : f32 to vector<8x128xf32>
    %293 = arith.mulf %292, %291 : vector<8x128xf32>
    %294 = arith.addf %260, %293 : vector<8x128xf32>
    %c0_92 = arith.constant 0 : index
    %c0_93 = arith.constant 0 : index
    %295 = vector.load %arg14[%c0_92, %c0_93] : memref<8x128xf32, #tpu.memory_space<vmem>>, vector<8x128xf32>
    tpu.vector_store %arg14[%c0_92, %c0_93], %294 {strides = array<i32>} : memref<8x128xf32, #tpu.memory_space<vmem>>, vector<8x128xf32>,
    %c0_94 = arith.constant 0 : index
    %c0_95 = arith.constant 0 : index
    %c0_96 = arith.constant 0 : index
    %296 = vector.load %arg13[%c0_94, %c0_95, %c0_96] : memref<1x8x128xf32, #tpu.memory_space<vmem>>, vector<1x8x128xf32>
    %297 = vector.shape_cast %296 : vector<1x8x128xf32> to vector<8x128xf32>
    %298 = vector.shape_cast %294 : vector<8x128xf32> to vector<1x8x128xf32>
    tpu.vector_store %arg13[%c0_94, %c0_95, %c0_96], %298 {strides = array<i32>} : memref<1x8x128xf32, #tpu.memory_space<vmem>>, vector<1x8x128xf32>,
    return
  }
  func.func @transform_0(%arg0: i32, %arg1: i32) -> (i32, i32, i32) {
    %c0_i32 = arith.constant 0 : i32
    %c0_i32_0 = arith.constant 0 : i32
    return %arg1, %arg0, %c0_i32 : i32, i32, i32
  }
  func.func @transform_1(%arg0: i32, %arg1: i32) -> (i32, i32, i32) {
    %c0_i32 = arith.constant 0 : i32
    %c0_i32_0 = arith.constant 0 : i32
    return %arg1, %arg0, %c0_i32 : i32, i32, i32
  }
  func.func @transform_2(%arg0: i32, %arg1: i32) -> (i32, i32) {
    %c0_i32 = arith.constant 0 : i32
    %c0_i32_0 = arith.constant 0 : i32
    return %arg0, %c0_i32 : i32, i32
  }
  func.func @transform_3(%arg0: i32, %arg1: i32) -> (i32, i32) {
    %c0_i32 = arith.constant 0 : i32
    %c0_i32_0 = arith.constant 0 : i32
    %c0_i32_1 = arith.constant 0 : i32
    return %c0_i32, %c0_i32_0 : i32, i32
  }
  func.func @transform_4(%arg0: i32, %arg1: i32) -> (i32, i32) {
    %c0_i32 = arith.constant 0 : i32
    %c0_i32_0 = arith.constant 0 : i32
    %c0_i32_1 = arith.constant 0 : i32
    return %c0_i32, %c0_i32_0 : i32, i32
  }
  func.func @transform_5(%arg0: i32, %arg1: i32) -> (i32, i32) {
    %c0_i32 = arith.constant 0 : i32
    %c0_i32_0 = arith.constant 0 : i32
    %c0_i32_1 = arith.constant 0 : i32
    return %c0_i32, %c0_i32_0 : i32, i32
  }
  func.func @transform_6(%arg0: i32, %arg1: i32) -> (i32, i32) {
    %c0_i32 = arith.constant 0 : i32
    %c0_i32_0 = arith.constant 0 : i32
    %c0_i32_1 = arith.constant 0 : i32
    return %c0_i32, %c0_i32_0 : i32, i32
  }
  func.func @transform_7(%arg0: i32, %arg1: i32) -> (i32, i32) {
    %c0_i32 = arith.constant 0 : i32
    %c0_i32_0 = arith.constant 0 : i32
    %c0_i32_1 = arith.constant 0 : i32
    return %c0_i32, %c0_i32_0 : i32, i32
  }
  func.func @transform_8(%arg0: i32, %arg1: i32) -> (i32, i32) {
    %c0_i32 = arith.constant 0 : i32
    %c0_i32_0 = arith.constant 0 : i32
    %c0_i32_1 = arith.constant 0 : i32
    return %c0_i32, %c0_i32_0 : i32, i32
  }
  func.func @transform_9(%arg0: i32, %arg1: i32) -> (i32, i32) {
    %c0_i32 = arith.constant 0 : i32
    %c0_i32_0 = arith.constant 0 : i32
    %c0_i32_1 = arith.constant 0 : i32
    return %c0_i32, %c0_i32_0 : i32, i32
  }
  func.func @transform_10(%arg0: i32, %arg1: i32) -> (i32, i32) {
    %c0_i32 = arith.constant 0 : i32
    %c0_i32_0 = arith.constant 0 : i32
    return %arg0, %c0_i32 : i32, i32
  }
  func.func @transform_11(%arg0: i32, %arg1: i32) -> (i32, i32, i32) {
    %c0_i32 = arith.constant 0 : i32
    %c0_i32_0 = arith.constant 0 : i32
    return %arg1, %arg0, %c0_i32 : i32, i32, i32
  }
}

</mosaic_0001>

<bundles_post_ra>
// kernel: tpu_custom_call.1
= control target key start
LH: loop header
LB: loop body
LE: loop exit
PB: predicated region body
PF: predicated region fallthrough
CT: control target
= control target key end

     0   :  { %s7074_s0 = inlined_call_operand.vmem [shape: f32[8,8,1], index: 0, kind: input, shape index: {}]   ;;  %s7075_s1 = inlined_call_operand.vmem [shape: f32[8,8,4], index: 1, kind: input, shape index: {}]   ;;  %s7076_s2 = inlined_call_operand.vmem [shape: f32[8,32], index: 2, kind: input, shape index: {}]   ;;  %s7077_s3 = inlined_call_operand.vmem [shape: f32[32,128], index: 3, kind: input, shape index: {}]   ;;  %s7078_s4 = inlined_call_operand.vmem [shape: f32[1,128], index: 4, kind: input, shape index: {}]   ;;  %s7079_s5 = inlined_call_operand.vmem [shape: f32[132,128], index: 5, kind: input, shape index: {}]   ;;  %s7080_s6 = inlined_call_operand.vmem [shape: f32[1,128], index: 6, kind: input, shape index: {}]   ;;  %s7081_s7 = inlined_call_operand.hbm [shape: f32[128,128], index: 7, kind: input, shape index: {}]   ;;  %s7082_s8 = inlined_call_operand.vmem [shape: f32[1,128], index: 8, kind: input, shape index: {}]   ;;  %s7083_s9 = inlined_call_operand.vmem [shape: f32[1,128], index: 9, kind: input, shape index: {}]   ;;  %s7084_s10 = inlined_call_operand.hbm [shape: f32[8,128], index: 10, kind: output, shape index: {0}]   ;;  %s7085_s11 = inlined_call_operand.hbm [shape: f32[8,8,128], index: 11, kind: output, shape index: {1}]  }
   0x1   :  { %7096 = sst [smem:[#allocation16_spill]] %s7081_s7 }
   0x2   :  { %17 = vsyncpa [#allocation4], 0 }
   0x3   :  { %18 = vsyncpa [#allocation5], 0 }
   0x4   :  { %19 = vsyncpa [#allocation8], 0 }
   0x5   :  { %21 = vsyncpa [#allocation8 + $0x1], 0  ;;  %s6106_s17 = smov 0   ;;  %s6108_s18 = smov 0  }
   0x6   :  { %s6110_s19 = smov 0   ;;  %s6112_s20 = smov 0  }
   0x7   :  { %s6114_s21 = smov 0   ;;  %s6116_s22 = smov 0  }
   0x8 LB: > { %7097 = sst [smem:[#allocation12_spill]] %s6020_s19  ;;  %s3240_s23 = sadd.s32 4294967295, %s6032_s22   ;;  %s6032_s22 = sphi %s6116_s22, %s27_s22   ;;  %s6028_s21 = sphi %s6114_s21, %s7117_s21   ;;  %s6024_s20 = sphi %s6112_s20, %s7116_s20   ;;  %s6020_s19 = sphi %s6110_s19, %s7115_s19   ;;  %s6016_s18 = sphi %s6108_s18, %s7119_s18   ;;  %s6012_s17 = sphi %s6106_s17, %s7118_s17  }
   0x9   : > { %7098 = sst [smem:[#allocation13_spill]] %s6028_s21  ;;  %s3241_s24 = sadd.s32 4294967294, %s6032_s22  }
   0xa   : > { %s36_s25 = sadd.s32 1, %s6028_s21  ;;  %s303_s26 = sadd.s32 1, %s6020_s19 }
   0xb   : > { %p37_p0 = scmp.ge.s32.totalorder %s36_s25, 8  ;;  %p313_p1 = scmp.ne.s32.totalorder %s6020_s19, %s6016_s18 }
   0xc   : > { %p6142_p2 = scmp.eq.s32.totalorder %s3240_s23, 7  ;;  %p319_p3 = scmp.ne.s32.totalorder %s6016_s18, %s6012_s17 }
   0xd   : > { %s7121_s25 = smov (%p37_p0, %s36_s25), 0  ;;  %p320_p5 = scmp.eq.s32.totalorder %s3241_s24, 7 }
   0xe   : > { %s7099_s27 = scalar_select %p6142_p2, 1, 0 }
   0xf   : > { %7100 = sst [smem:[#allocation14_spill]] %s7121_s25  ;;  %p6152_p4 = por %p6142_p2, %p313_p1 }
  0x10   : > { %s298_s29 = ssub.s32 %s6028_s21, %s7121_s25  ;;  %p3242_p6 = scmp.ge.s32.totalorder %s6032_s22, 1 }
  0x11   : > { %s7101_s28 = scalar_select %p6152_p4, 1, 0 }
  0x12   : > { %p301_p7 = scmp.eq.s32.totalorder %s298_s29, 0  ;;  %p6159_p8 = por %p320_p5, %p319_p3 }
  0x13   : > { %p327_p9 = scmp.lt.s32.totalorder %s6032_s22, 9  ;;  %p6171_p11 = scmp.eq.s32.totalorder %s3240_s23, 0 }
  0x14   : > { %s7102_s30 = scalar_select %p6159_p8, 1, 0 }
  0x15   : > { %s6165_s12 = scalar_select %p301_p7, %s6020_s19, %s303_s26  }
  0x16   : > { %p6167_p10 = pnand %p3242_p6, %p327_p9  ;;  %s6034_s15 = smov [#allocation3]  }
  0x17   : > { %7103 = sst [smem:[#allocation15_spill]] %s6165_s12  ;;  %s358_s16 = sshll.u32 %s6034_s15, 4  ;;  %s359_s16 = int_to_ptr.vmem [resolvable:$true] %s358_s16 }
  0x18   : > { %s7104_s13 = scalar_select %p6167_p10, 1, 0 }
  0x19   : > { %s7105_s14 = scalar_select %p6171_p11, 1, 0 }
  0x1a   : > { %p5753_p12 = pneg %p6167_p10  ;;  %s7107_s7 = sld [smem:[#allocation16_spill]] }
  0x1c   : > { %p6179_p13 = pnand %p6171_p11, %p5753_p12 }
  0x1e   : > { %p5894_p1 = pneg %p6179_p13 }
  0x20   : > { %s5892_s25 = scalar_lea.hbm %s7107_s7, 2048 }
  0x21   : > { %p5893_p0 = scmp.ne.s32.totalorder %s7107_s7, %s5892_s25  ;;  %p5899_p6 = scmp.lt.u32.totalorder %s5892_s25, %s7107_s7 }
  0x23   : > { %p5895_p3 = pnand %p5894_p1, %p5893_p0 }
  0x25   : > { %p5896_p5 = pneg %p5895_p3 }
  0x27   : > { %p5901_p7 = pnand %p5899_p6, %p5896_p5 }
  0x29   : > { %5904 = shalt.err (!%p5901_p7)
}
  0x2a   : > { %s5905_s19 = scalar_lea.vmem %s359_s16, 2048  ;;  %p5913_p4 = scmp.lt.s32.totalorder %s359_s16, %s359_s16 }
  0x2b   : > { %p5906_p9 = scmp.ne.s32.totalorder %s359_s16, %s5905_s19  ;;  %p5914_p2 = scmp.lt.s32.totalorder %s5905_s19, %s5905_s19 }
  0x2d   : > { %p5908_p12 = pnand %p5906_p9, %p5894_p1  ;;  %p5915_p11 = por %p5914_p2, %p5913_p4 }
  0x2f   : > { %p5909_p8 = pneg %p5908_p12 }
  0x31   : > { %p5916_p10 = pnand %p5915_p11, %p5909_p8 }
  0x33   : > { %5919 = shalt.err (!%p5916_p10)
}
  0x34   : > { %s6035_s21 = smov 128   ;;  %s6036_s26 = smov 8  }
  0x35   : > { %5756 = dma.hbm_to_vmem [thread:$0]  (!%p6179_p13), %s7107_s7, 2048, %s359_s16, [#allocation4], %s6035_s21, %s6035_s21, %s6036_s26  }
  0x36   : > { %p7108_p0 = scmp.ne.s32.totalorder %s7104_s13, 0 }
  0x37   : > { %p7109_p3 = scmp.ne.s32.totalorder (!%p7108_p0), %s7105_s14, 0 }
  0x38   : > { %400 = sbr.rel (%p7108_p0) target bundleno = 7913 (0x1ee9), region = 60 }
  0x3f   : > { %5999 = dma.done.wait (%p7109_p3), [#allocation4], 2048  }
  0x40   : > { %6001 = vsyncadd (%p7109_p3), [#allocation4], 4294965248  ;;  %s7095_s19 = sand.u32 1, %s6016_s18   ;;  %p453_p2 = scmp.lt.s32.totalorder %s6024_s20, 7 }
  0x41   : > { %s6209_s25 = sshll.u32 %s7095_s19, 3  ;;  %p3251_p4 = scmp.ne.s32.totalorder %s6024_s20, 0 }
  0x42   : > { %s454_s12 = scalar_select %p453_p2, %s6024_s20, 7 }
  0x43   : > { %s452_s29 = scalar_lea.vmem [#allocation7], %s6209_s25  ;;  %474 = sbr.rel (%p3251_p4) target bundleno = 292 (0x124), region = 68  ;;  %v476_v0 = vld [vmem:[%s7077_s3] sm:$0xff] (!%p3251_p4)  ;;  %v477_v1 = vld [vmem:[%s7077_s3 + $0x8] sm:$0xff] (!%p3251_p4)  ;;  %v478_v2 = vld [vmem:[%s7077_s3 + $0x10] sm:$0xff] (!%p3251_p4)  ;;  %v6037_v3 = vmov (!%p3251_p4), 0.0|0.0  }
  0x44   : > { %s3249_s16 = sshll.u32 %s454_s12, 3  ;;  %4945 = vmatprep.subr.bf16.mxu0 (!%p3251_p4), %v6037_v3  ;;  %v4946_v4 = vpack.c.bf16 (!%p3251_p4), %v477_v1, %v476_v0  ;;  %v479_v5 = vld [vmem:[%s7077_s3 + $0x18] sm:$0xff] (!%p3251_p4)  ;;  %vm6038_vm0 = vmmov (!%p3251_p4), 0   ;;  %v6039_v6 = vmov (!%p3251_p4), 0.0   ;;  %v475_v8 = vld [vmem:[%s7076_s2] sm:$0xff] (!%p3251_p4)  ;;  %vm487_vm1 = vcmask (!%p3251_p4), 261120  }
  0x45   : > { %s6215_s15 = scalar_lea.vmem %s7074_s0, %s3249_s16  ;;  %s6220_s26 = scalar_lea.vmem %s7075_s1, %s3249_s16  ;;  %3822 = vmatprep.mubr.msk.f32.mxu0 (!%p3251_p4), %vm6038_vm0, %v6039_v6  ;;  %v4949_v7 = vpack.c.bf16 (!%p3251_p4), %v479_v5, %v478_v2  ;;  %v3252_v9 = vld [vmem:[%s7078_s4] ss:$0 sm:$0xff] (!%p3251_p4) }
  0x46   : > { %4947 = vmatpush3.bf16.msra.mxu0 (!%p3251_p4), %v4946_v4 }
  0x47   : > { %4948 = vmatprep.subr.bf16.mxu0 (!%p3251_p4), %v6037_v3 }
  0x4a   : > { %4950 = vmatpush3.bf16.msra.mxu0 %v4949_v7 }
  0x4d   : > { %3823 = vmatmul.mubr.msk.f32.vlgmr.msra.gmra.mrb[0].mxu0 %vm487_vm1, %v475_v8 }
 0x120   : > { %v557_v10 = vpop.f32.mrb[0].mxu0 }
 0x121   : > { %v558_v11 = vadd.f32 %v3252_v9, %v557_v10  ;;  %v3824_v12 = vpop.f32.mrb[1].mxu0 }
 0x123   : > { %561 = vst [vmem:[#allocation6] sm:$0xff] %v558_v11  ;;  %562 = vst [vmem:[#allocation2] sm:$0xff] %v558_v11 }
 0x124 PF: > { %v587_v13 = vld [vmem:[%s7079_s5] sm:$0xff]  ;;  %v588_v14 = vld [vmem:[%s7079_s5 + $0x8] sm:$0xff]  ;;  %v589_v15 = vld [vmem:[%s7079_s5 + $0x10] sm:$0xff]  ;;  %v6040_v16 = vmov 0.0|0.0   ;;  %vm611_vm2 = vcmask 31744   ;;  %v6041_v54 = vmov 0.0  }
 0x125   : > { %4951 = vmatprep.subr.bf16.mxu0 %v6040_v16  ;;  %v4952_v17 = vpack.c.bf16 %v588_v14, %v587_v13  ;;  %v590_v18 = vld [vmem:[%s7079_s5 + $0x18] sm:$0xff]  ;;  %4975 = vmatprep.subr.bf16.mxu1 %v6040_v16  ;;  %v591_v20 = vld [vmem:[%s7079_s5 + $0x20] sm:$0xff]  ;;  %v592_v21 = vld [vmem:[%s7079_s5 + $0x28] sm:$0xff]  ;;  %vm615_vm3 = vcmask 1043456   ;;  %vm6042_vm4 = vmmov 0   ;;  %v6043_v3 = vmov 0  }
 0x126   : > { %v4955_v19 = vpack.c.bf16 %v590_v18, %v589_v15  ;;  %v564_v22 = vld [vmem:[%s6220_s26] sm:$0xff]  ;;  %v690_v23 = vld [vmem:[#allocation3] sm:$0xff]  ;;  %v691_v24 = vld [vmem:[#allocation3 + $0x8] sm:$0xff]  ;;  %v4958_v25 = vpack.c.bf16 %v592_v21, %v591_v20  ;;  %3857 = vmatprep.mubr.msk.f32.mxu1 %vm6042_vm4, %v6041_v54  ;;  %5825 = vset.pattern.permute.xlu0 %v6043_v3  ;;  %s6044_s12 = smov [#allocation6]   ;;  %p7110_p10 = scmp.ne.s32.totalorder %s7099_s27, 0 }
 0x127   : > { %4953 = vmatpush1.bf16.msra.mxu0 %v4952_v17  ;;  %3258 = vmatprep.mubr.msk.f32.mxu0 %vm611_vm2, %v564_v22  ;;  %v6264_v26 = vpack.c.bf16 %v691_v24, %v690_v23  ;;  %v692_v27 = vld [vmem:[#allocation3 + $0x10] sm:$0xff]  ;;  %v693_v28 = vld [vmem:[#allocation3 + $0x18] sm:$0xff]  ;;  %v593_v29 = vld [vmem:[%s7079_s5 + $0x30] sm:$0xff]  ;;  %s3098_s13 = sshll.u32 %s6044_s12, 4  ;;  %s3099_s13 = int_to_ptr.vmem [resolvable:$true] %s3098_s13 }
 0x128   : > { %4954 = vmatprep.subr.bf16.mxu0 %v6040_v16  ;;  %v594_v30 = vld [vmem:[%s7079_s5 + $0x38] sm:$0xff]  ;;  %v6274_v31 = vpack.c.bf16 %v693_v28, %v692_v27  ;;  %v694_v32 = vld [vmem:[#allocation3 + $0x20] sm:$0xff]  ;;  %v595_v35 = vld [vmem:[%s7079_s5 + $0x40] sm:$0xff]  ;;  %s5920_s24 = scalar_lea.vmem %s3099_s13, 128  ;;  %p5927_p1 = scmp.lt.s32.totalorder %s3099_s13, %s3099_s13 }
 0x129   : > { %4977 = vmatpush3.bf16.msra.mxu1 %v6264_v26  ;;  %v695_v33 = vld [vmem:[#allocation3 + $0x28] sm:$0xff]  ;;  %v4961_v34 = vpack.c.bf16 %v594_v30, %v593_v29  ;;  %v596_v36 = vld [vmem:[%s7079_s5 + $0x48] sm:$0xff]  ;;  %v696_v38 = vld [vmem:[#allocation3 + $0x30] sm:$0xff]  ;;  %p5921_p8 = scmp.ne.s32.totalorder %s3099_s13, %s5920_s24  ;;  %p5928_p5 = scmp.lt.s32.totalorder %s5920_s24, %s5920_s24 }
 0x12a   : > { %4978 = vmatprep.subr.bf16.mxu1 %v6040_v16  ;;  %v6285_v37 = vpack.c.bf16 %v695_v33, %v694_v32  ;;  %v697_v39 = vld [vmem:[#allocation3 + $0x38] sm:$0xff]  ;;  %v4964_v40 = vpack.c.bf16 %v596_v36, %v595_v35  ;;  %v597_v41 = vld [vmem:[%s7079_s5 + $0x50] sm:$0xff]  ;;  %v598_v42 = vld [vmem:[%s7079_s5 + $0x58] sm:$0xff] }
 0x12b   : > { %4956 = vmatpush1.bf16.msra.mxu0 %v4955_v19  ;;  %v6296_v43 = vpack.c.bf16 %v697_v39, %v696_v38  ;;  %v698_v44 = vld [vmem:[#allocation3 + $0x40] sm:$0xff]  ;;  %v699_v45 = vld [vmem:[#allocation3 + $0x48] sm:$0xff]  ;;  %v4967_v46 = vpack.c.bf16 %v598_v42, %v597_v41  ;;  %v599_v47 = vld [vmem:[%s7079_s5 + $0x60] sm:$0xff]  ;;  %p5922_p11 = pnand %p5921_p8, %p7110_p10  ;;  %p5929_p6 = por %p5928_p5, %p5927_p1 }
 0x12c   : > { %4957 = vmatprep.subr.bf16.mxu0 %v6040_v16  ;;  %v600_v48 = vld [vmem:[%s7079_s5 + $0x68] sm:$0xff]  ;;  %v6307_v49 = vpack.c.bf16 %v699_v45, %v698_v44  ;;  %v601_v51 = vld [vmem:[%s7079_s5 + $0x70] sm:$0xff]  ;;  %v602_v52 = vld [vmem:[%s7079_s5 + $0x78] sm:$0xff] }
 0x12d   : > { %4980 = vmatpush3.bf16.msra.mxu1 %v6274_v31  ;;  %v4970_v50 = vpack.c.bf16 %v600_v48, %v599_v47  ;;  %v4973_v53 = vpack.c.bf16 %v602_v52, %v601_v51  ;;  %v603_v55 = vld [vmem:[%s7079_s5 + $0x80] sm:$0xf]  ;;  %v563_v56 = vld [vmem:[#allocation2] sm:$0xff]  ;;  %v702_v60 = vld [vmem:[#allocation3 + $0x60] sm:$0xff]  ;;  %p5923_p13 = pneg %p5922_p11 }
 0x12e   : > { %4981 = vmatprep.subr.bf16.mxu1 %v6040_v16  ;;  %v700_v57 = vld [vmem:[#allocation3 + $0x50] sm:$0xff]  ;;  %v701_v58 = vld [vmem:[#allocation3 + $0x58] sm:$0xff]  ;;  %v703_v61 = vld [vmem:[#allocation3 + $0x68] sm:$0xff] }
 0x12f   : > { %4959 = vmatpush1.bf16.msra.mxu0 %v4958_v25  ;;  %v6335_v59 = vpack.c.bf16 %v701_v58, %v700_v57  ;;  %v6340_v62 = vpack.c.bf16 %v703_v61, %v702_v60  ;;  %v704_v63 = vld [vmem:[#allocation3 + $0x70] sm:$0xff]  ;;  %v705_v0 = vld [vmem:[#allocation3 + $0x78] sm:$0xff]  ;;  %p5930_p7 = pnand %p5929_p6, %p5923_p13 }
 0x130   : > { %4960 = vmatprep.subr.bf16.mxu0 %v6040_v16  ;;  %v6348_v1 = vpack.c.bf16 %v705_v0, %v704_v63  ;;  %v565_v2 = vld [vmem:[%s6215_s15] sm:$0xff] }
 0x131   : > { %4983 = vmatpush3.bf16.msra.mxu1 %v6285_v37  ;;  %570 = vperm.xlu0 %5825, %v565_v2   ;;  %v3256_v4 = vld [vmem:[%s7080_s6] ss:$0 sm:$0xff] }
 0x132   : > { %4984 = vmatprep.subr.bf16.mxu1 %v6040_v16  ;;  %v3254_v9 = vld [vmem:[%s7083_s9] ss:$0 sm:$0xff] }
 0x133   : > { %4962 = vmatpush1.bf16.msra.mxu0 %v4961_v34  ;;  %v3255_v12 = vld [vmem:[%s7082_s8] ss:$0 sm:$0xff] }
 0x134   : > { %4963 = vmatprep.subr.bf16.mxu0 %v6040_v16 }
 0x135   : > { %4986 = vmatpush3.bf16.msra.mxu1 %v6296_v43 }
 0x136   : > { %4987 = vmatprep.subr.bf16.mxu1 %v6040_v16 }
 0x137   : > { %4965 = vmatpush1.bf16.msra.mxu0 %v4964_v40 }
 0x138   : > { %4966 = vmatprep.subr.bf16.mxu0 %v6040_v16 }
 0x139   : > { %4989 = vmatpush3.bf16.msra.mxu1 %v6307_v49 }
 0x13a   : > { %4990 = vmatprep.subr.bf16.mxu1 %v6040_v16 }
 0x13b   : > { %4968 = vmatpush1.bf16.msra.mxu0 %v4967_v46 }
 0x13c   : > { %4969 = vmatprep.subr.bf16.mxu0 %v6040_v16 }
 0x13d   : > { %4992 = vmatpush3.bf16.msra.mxu1 %v6335_v59 }
 0x13e   : > { %4993 = vmatprep.subr.bf16.mxu1 %v6040_v16 }
 0x13f   : > { %4971 = vmatpush1.bf16.msra.mxu0 %v4970_v50 }
 0x140   : > { %4972 = vmatprep.subr.bf16.mxu0 %v6040_v16 }
 0x141   : > { %4995 = vmatpush3.bf16.msra.mxu1 %v6340_v62 }
 0x142   : > { %4996 = vmatprep.subr.bf16.mxu1 %v6040_v16 }
 0x143   : > { %4974 = vmatpush1.bf16.msra.mxu0 %v4973_v53 }
 0x144   : > { %651 = vmatprep.subr.mxu0 %v6041_v54 }
 0x145   : > { %4998 = vmatpush3.bf16.msra.mxu1 %v6348_v1 }
 0x146   : > { %4999 = vmatprep.subr.bf16.mxu1 %v6040_v16 }
 0x147   : > { %3257 = vmatpush1.msk.msra.mxu0 %vm615_vm3, %v603_v55 }
 0x148   : > { %684 = vmatmul.mubr.f32.vlgmr.msra.gmra.mrb[0].mxu0 %v563_v56  ;;  %5023 = vmatprep.subr.bf16.mxu0 %v6040_v16 }
 0x149   : > { %5025 = vmatpush3.bf16.msra.mxu0 %v6264_v26  ;;  %3927 = vmatprep.mubr.msk.f32.mxu0 %vm6042_vm4, %v6041_v54 }
 0x14a   : > { %5026 = vmatprep.subr.bf16.mxu0 %v6040_v16 }
 0x14d   : > { %5028 = vmatpush3.bf16.msra.mxu0 %v6274_v31 }
 0x14e   : > { %5029 = vmatprep.subr.bf16.mxu0 %v6040_v16 }
 0x151   : > { %5031 = vmatpush3.bf16.msra.mxu0 %v6285_v37 }
 0x152   : > { %5032 = vmatprep.subr.bf16.mxu0 %v6040_v16 }
 0x155   : > { %5034 = vmatpush3.bf16.msra.mxu0 %v6296_v43 }
 0x156   : > { %5035 = vmatprep.subr.bf16.mxu0 %v6040_v16 }
 0x159   : > { %5037 = vmatpush3.bf16.msra.mxu0 %v6307_v49 }
 0x15a   : > { %5038 = vmatprep.subr.bf16.mxu0 %v6040_v16 }
 0x15d   : > { %5040 = vmatpush3.bf16.msra.mxu0 %v6335_v59 }
 0x15e   : > { %5041 = vmatprep.subr.bf16.mxu0 %v6040_v16 }
 0x161   : > { %5043 = vmatpush3.bf16.msra.mxu0 %v6340_v62 }
 0x162   : > { %5044 = vmatprep.subr.bf16.mxu0 %v6040_v16 }
 0x165   : > { %5046 = vmatpush3.bf16.msra.mxu0 %v6348_v1 }
 0x166   : > { %5071 = vmatprep.subr.bf16.mxu0 %v6040_v16 }
 0x1b0   : > { %v571_v10 = vpop.permute.xlu0 %570 }
 0x1b1   : > { %v579_v11 = vmul.f32 %v3254_v9, %v571_v10 }
 0x1b3   : > { %v6388_v13 = vadd.f32 %v3255_v12, %v579_v11 }
 0x21b   : > { %v685_v5 = vpop.f32.mrb[0].mxu0 }
 0x21c   : > { %v686_v6 = vadd.f32 %v3256_v4, %v685_v5  ;;  %v687_v7 = vpop.f32.mrb[1].mxu0 }
 0x21e   : > { %5826 = vtanh.f32 %v686_v6 }
 0x228   : > { %v6361_v8 = vpop.eup %5826 }
 0x229   : > { %3858 = vmatmul.mubr.f32.vlgmr.msra.gmra.mrb[0].mxu1 %v6361_v8 }
 0x22a   : > { %5001 = vmatpush3.bf16.msra.mxu1 %v6264_v26  ;;  %3892 = vmatprep.mubr.msk.f32.mxu1 %vm6042_vm4, %v6041_v54 }
 0x22b   : > { %5002 = vmatprep.subr.bf16.mxu1 %v6040_v16 }
 0x22e   : > { %5004 = vmatpush3.bf16.msra.mxu1 %v6274_v31 }
 0x22f   : > { %5005 = vmatprep.subr.bf16.mxu1 %v6040_v16 }
 0x232   : > { %5007 = vmatpush3.bf16.msra.mxu1 %v6285_v37 }
 0x233   : > { %5008 = vmatprep.subr.bf16.mxu1 %v6040_v16 }
 0x236   : > { %5010 = vmatpush3.bf16.msra.mxu1 %v6296_v43 }
 0x237   : > { %5011 = vmatprep.subr.bf16.mxu1 %v6040_v16 }
 0x23a   : > { %5013 = vmatpush3.bf16.msra.mxu1 %v6307_v49 }
 0x23b   : > { %5014 = vmatprep.subr.bf16.mxu1 %v6040_v16 }
 0x23e   : > { %5016 = vmatpush3.bf16.msra.mxu1 %v6335_v59 }
 0x23f   : > { %5017 = vmatprep.subr.bf16.mxu1 %v6040_v16 }
 0x242   : > { %5019 = vmatpush3.bf16.msra.mxu1 %v6340_v62 }
 0x243   : > { %5020 = vmatprep.subr.bf16.mxu1 %v6040_v16 }
 0x246   : > { %5022 = vmatpush3.bf16.msra.mxu1 %v6348_v1 }
 0x247   : > { %5047 = vmatprep.subr.bf16.mxu1 %v6040_v16 }
 0x2fc   : > { %v772_v14 = vpop.f32.mrb[0].mxu1 }
 0x2fd   : > { %v773_v15 = vadd.f32 %v772_v14, %v6388_v13  ;;  %v3859_v17 = vpop.f32.mrb[1].mxu1 }
 0x2ff   : > { %5828 = vtanh.f32 %v773_v15 }
 0x309   : > { %v5829_v18 = vpop.eup %5828 }
 0x30a   : > { %v777_v19 = vmul.f32 0.0625, %v5829_v18 }
 0x30c   : > { %v778_v20 = vadd.f32 %v6361_v8, %v777_v19 }
 0x30e   : > { %3893 = vmatmul.mubr.f32.vlgmr.msra.gmra.mrb[2].mxu1 %v778_v20 }
 0x30f   : > { %5049 = vmatpush3.bf16.msra.mxu1 %v6264_v26  ;;  %3962 = vmatprep.mubr.msk.f32.mxu1 %vm6042_vm4, %v6041_v54 }
 0x310   : > { %5050 = vmatprep.subr.bf16.mxu1 %v6040_v16 }
 0x313   : > { %5052 = vmatpush3.bf16.msra.mxu1 %v6274_v31 }
 0x314   : > { %5053 = vmatprep.subr.bf16.mxu1 %v6040_v16 }
 0x317   : > { %5055 = vmatpush3.bf16.msra.mxu1 %v6285_v37 }
 0x318   : > { %5056 = vmatprep.subr.bf16.mxu1 %v6040_v16 }
 0x31b   : > { %5058 = vmatpush3.bf16.msra.mxu1 %v6296_v43 }
 0x31c   : > { %5059 = vmatprep.subr.bf16.mxu1 %v6040_v16 }
 0x31f   : > { %5061 = vmatpush3.bf16.msra.mxu1 %v6307_v49 }
 0x320   : > { %5062 = vmatprep.subr.bf16.mxu1 %v6040_v16 }
 0x323   : > { %5064 = vmatpush3.bf16.msra.mxu1 %v6335_v59 }
 0x324   : > { %5065 = vmatprep.subr.bf16.mxu1 %v6040_v16 }
 0x327   : > { %5067 = vmatpush3.bf16.msra.mxu1 %v6340_v62 }
 0x328   : > { %5068 = vmatprep.subr.bf16.mxu1 %v6040_v16 }
 0x32b   : > { %5070 = vmatpush3.bf16.msra.mxu1 %v6348_v1 }
 0x32c   : > { %5095 = vmatprep.subr.bf16.mxu1 %v6040_v16 }
 0x3e1   : > { %v845_v21 = vpop.f32.mrb[2].mxu1 }
 0x3e2   : > { %v846_v22 = vadd.f32 %v845_v21, %v6388_v13  ;;  %v3894_v23 = vpop.f32.mrb[3].mxu1 }
 0x3e4   : > { %5830 = vtanh.f32 %v846_v22 }
 0x3ee   : > { %v5831_v24 = vpop.eup %5830 }
 0x3ef   : > { %v850_v25 = vmul.f32 0.0625, %v5831_v24  ;;  %v996_v32 = vmul.f32 2.0, %v5831_v24 }
 0x3f1   : > { %v851_v27 = vadd.f32 %v6361_v8, %v850_v25  ;;  %v997_v34 = vadd.f32 %v5829_v18, %v996_v32 }
 0x3f3   : > { %3928 = vmatmul.mubr.f32.vlgmr.msra.gmra.mrb[2].mxu0 %v851_v27 }
 0x3f4   : > { %5073 = vmatpush3.bf16.msra.mxu0 %v6264_v26  ;;  %3997 = vmatprep.mubr.msk.f32.mxu0 %vm6042_vm4, %v6041_v54 }
 0x3f5   : > { %5074 = vmatprep.subr.bf16.mxu0 %v6040_v16 }
 0x3f8   : > { %5076 = vmatpush3.bf16.msra.mxu0 %v6274_v31 }
 0x3f9   : > { %5077 = vmatprep.subr.bf16.mxu0 %v6040_v16 }
 0x3fc   : > { %5079 = vmatpush3.bf16.msra.mxu0 %v6285_v37 }
 0x3fd   : > { %5080 = vmatprep.subr.bf16.mxu0 %v6040_v16 }
 0x400   : > { %5082 = vmatpush3.bf16.msra.mxu0 %v6296_v43 }
 0x401   : > { %5083 = vmatprep.subr.bf16.mxu0 %v6040_v16 }
 0x404   : > { %5085 = vmatpush3.bf16.msra.mxu0 %v6307_v49 }
 0x405   : > { %5086 = vmatprep.subr.bf16.mxu0 %v6040_v16 }
 0x408   : > { %5088 = vmatpush3.bf16.msra.mxu0 %v6335_v59 }
 0x409   : > { %5089 = vmatprep.subr.bf16.mxu0 %v6040_v16 }
 0x40c   : > { %5091 = vmatpush3.bf16.msra.mxu0 %v6340_v62 }
 0x40d   : > { %5092 = vmatprep.subr.bf16.mxu0 %v6040_v16 }
 0x410   : > { %5094 = vmatpush3.bf16.msra.mxu0 %v6348_v1 }
 0x411   : > { %5119 = vmatprep.subr.bf16.mxu0 %v6040_v16 }
 0x4c6   : > { %v918_v28 = vpop.f32.mrb[2].mxu0 }
 0x4c7   : > { %v919_v29 = vadd.f32 %v918_v28, %v6388_v13  ;;  %v3929_v30 = vpop.f32.mrb[3].mxu0 }
 0x4c9   : > { %5832 = vtanh.f32 %v919_v29 }
 0x4d3   : > { %v5833_v33 = vpop.eup %5832 }
 0x4d4   : > { %v998_v35 = vmul.f32 2.0, %v5833_v33  ;;  %v923_v36 = vmul.f32 0.125, %v5833_v33 }
 0x4d6   : > { %v924_v38 = vadd.f32 %v6361_v8, %v923_v36  ;;  %v999_v39 = vadd.f32 %v998_v35, %v997_v34 }
 0x4d8   : > { %3963 = vmatmul.mubr.f32.vlgmr.msra.gmra.mrb[4].mxu1 %v924_v38 }
 0x4d9   : > { %5097 = vmatpush3.bf16.msra.mxu1 %v6264_v26  ;;  %4032 = vmatprep.mubr.msk.f32.mxu1 %vm6042_vm4, %v6041_v54 }
 0x4da   : > { %5098 = vmatprep.subr.bf16.mxu1 %v6040_v16 }
 0x4dd   : > { %5100 = vmatpush3.bf16.msra.mxu1 %v6274_v31 }
 0x4de   : > { %5101 = vmatprep.subr.bf16.mxu1 %v6040_v16 }
 0x4e1   : > { %5103 = vmatpush3.bf16.msra.mxu1 %v6285_v37 }
 0x4e2   : > { %5104 = vmatprep.subr.bf16.mxu1 %v6040_v16 }
 0x4e5   : > { %5106 = vmatpush3.bf16.msra.mxu1 %v6296_v43 }
 0x4e6   : > { %5107 = vmatprep.subr.bf16.mxu1 %v6040_v16 }
 0x4e9   : > { %5109 = vmatpush3.bf16.msra.mxu1 %v6307_v49 }
 0x4ea   : > { %5110 = vmatprep.subr.bf16.mxu1 %v6040_v16 }
 0x4ed   : > { %5112 = vmatpush3.bf16.msra.mxu1 %v6335_v59 }
 0x4ee   : > { %5113 = vmatprep.subr.bf16.mxu1 %v6040_v16 }
 0x4f1   : > { %5115 = vmatpush3.bf16.msra.mxu1 %v6340_v62 }
 0x4f2   : > { %5116 = vmatprep.subr.bf16.mxu1 %v6040_v16 }
 0x4f5   : > { %5118 = vmatpush3.bf16.msra.mxu1 %v6348_v1 }
 0x4f6   : > { %5143 = vmatprep.subr.bf16.mxu1 %v6040_v16 }
 0x5ab   : > { %v991_v40 = vpop.f32.mrb[4].mxu1 }
 0x5ac   : > { %v992_v41 = vadd.f32 %v991_v40, %v6388_v13  ;;  %v3964_v42 = vpop.f32.mrb[5].mxu1 }
 0x5ae   : > { %5834 = vtanh.f32 %v992_v41 }
 0x5b8   : > { %v5835_v44 = vpop.eup %5834 }
 0x5b9   : > { %v1000_v45 = vadd.f32 %v5835_v44, %v999_v39 }
 0x5bb   : > { %v1001_v46 = vmul.f32 0.020833334, %v1000_v45 }
 0x5bd   : > { %v6452_v47 = vadd.f32 %v6361_v8, %v1001_v46 }
 0x5bf   : > { %3998 = vmatmul.mubr.f32.vlgmr.msra.gmra.mrb[4].mxu0 %v6452_v47 }
 0x5c0   : > { %5121 = vmatpush3.bf16.msra.mxu0 %v6264_v26  ;;  %4067 = vmatprep.mubr.msk.f32.mxu0 %vm6042_vm4, %v6041_v54 }
 0x5c1   : > { %5122 = vmatprep.subr.bf16.mxu0 %v6040_v16 }
 0x5c4   : > { %5124 = vmatpush3.bf16.msra.mxu0 %v6274_v31 }
 0x5c5   : > { %5125 = vmatprep.subr.bf16.mxu0 %v6040_v16 }
 0x5c8   : > { %5127 = vmatpush3.bf16.msra.mxu0 %v6285_v37 }
 0x5c9   : > { %5128 = vmatprep.subr.bf16.mxu0 %v6040_v16 }
 0x5cc   : > { %5130 = vmatpush3.bf16.msra.mxu0 %v6296_v43 }
 0x5cd   : > { %5131 = vmatprep.subr.bf16.mxu0 %v6040_v16 }
 0x5d0   : > { %5133 = vmatpush3.bf16.msra.mxu0 %v6307_v49 }
 0x5d1   : > { %5134 = vmatprep.subr.bf16.mxu0 %v6040_v16 }
 0x5d4   : > { %5136 = vmatpush3.bf16.msra.mxu0 %v6335_v59 }
 0x5d5   : > { %5137 = vmatprep.subr.bf16.mxu0 %v6040_v16 }
 0x5d8   : > { %5139 = vmatpush3.bf16.msra.mxu0 %v6340_v62 }
 0x5d9   : > { %5140 = vmatprep.subr.bf16.mxu0 %v6040_v16 }
 0x5dc   : > { %5142 = vmatpush3.bf16.msra.mxu0 %v6348_v1 }
 0x5dd   : > { %5167 = vmatprep.subr.bf16.mxu0 %v6040_v16 }
 0x692   : > { %v1069_v48 = vpop.f32.mrb[4].mxu0 }
 0x693   : > { %v1070_v50 = vadd.f32 %v1069_v48, %v6388_v13  ;;  %v3999_v51 = vpop.f32.mrb[5].mxu0 }
 0x695   : > { %5836 = vtanh.f32 %v1070_v50 }
 0x69f   : > { %v5837_v52 = vpop.eup %5836 }
 0x6a0   : > { %v1074_v53 = vmul.f32 0.0625, %v5837_v52 }
 0x6a2   : > { %v1075_v55 = vadd.f32 %v1074_v53, %v6452_v47 }
 0x6a4   : > { %4033 = vmatmul.mubr.f32.vlgmr.msra.gmra.mrb[6].mxu1 %v1075_v55 }
 0x6a5   : > { %5145 = vmatpush3.bf16.msra.mxu1 %v6264_v26  ;;  %4102 = vmatprep.mubr.msk.f32.mxu1 %vm6042_vm4, %v6041_v54 }
 0x6a6   : > { %5146 = vmatprep.subr.bf16.mxu1 %v6040_v16 }
 0x6a9   : > { %5148 = vmatpush3.bf16.msra.mxu1 %v6274_v31 }
 0x6aa   : > { %5149 = vmatprep.subr.bf16.mxu1 %v6040_v16 }
 0x6ad   : > { %5151 = vmatpush3.bf16.msra.mxu1 %v6285_v37 }
 0x6ae   : > { %5152 = vmatprep.subr.bf16.mxu1 %v6040_v16 }
 0x6b1   : > { %5154 = vmatpush3.bf16.msra.mxu1 %v6296_v43 }
 0x6b2   : > { %5155 = vmatprep.subr.bf16.mxu1 %v6040_v16 }
 0x6b5   : > { %5157 = vmatpush3.bf16.msra.mxu1 %v6307_v49 }
 0x6b6   : > { %5158 = vmatprep.subr.bf16.mxu1 %v6040_v16 }
 0x6b9   : > { %5160 = vmatpush3.bf16.msra.mxu1 %v6335_v59 }
 0x6ba   : > { %5161 = vmatprep.subr.bf16.mxu1 %v6040_v16 }
 0x6bd   : > { %5163 = vmatpush3.bf16.msra.mxu1 %v6340_v62 }
 0x6be   : > { %5164 = vmatprep.subr.bf16.mxu1 %v6040_v16 }
 0x6c1   : > { %5166 = vmatpush3.bf16.msra.mxu1 %v6348_v1 }
 0x6c2   : > { %5191 = vmatprep.subr.bf16.mxu1 %v6040_v16 }
 0x777   : > { %v1142_v56 = vpop.f32.mrb[6].mxu1 }
 0x778   : > { %v1143_v57 = vadd.f32 %v1142_v56, %v6388_v13  ;;  %v4034_v58 = vpop.f32.mrb[7].mxu1 }
 0x77a   : > { %5838 = vtanh.f32 %v1143_v57 }
 0x784   : > { %v5839_v60 = vpop.eup %5838 }
 0x785   : > { %v1147_v61 = vmul.f32 0.0625, %v5839_v60  ;;  %v1293_v4 = vmul.f32 2.0, %v5839_v60 }
 0x787   : > { %v1148_v63 = vadd.f32 %v1147_v61, %v6452_v47  ;;  %v1294_v6 = vadd.f32 %v5837_v52, %v1293_v4 }
 0x789   : > { %4068 = vmatmul.mubr.f32.vlgmr.msra.gmra.mrb[6].mxu0 %v1148_v63 }
 0x78a   : > { %5169 = vmatpush3.bf16.msra.mxu0 %v6264_v26  ;;  %4137 = vmatprep.mubr.msk.f32.mxu0 %vm6042_vm4, %v6041_v54 }
 0x78b   : > { %5170 = vmatprep.subr.bf16.mxu0 %v6040_v16 }
 0x78e   : > { %5172 = vmatpush3.bf16.msra.mxu0 %v6274_v31 }
 0x78f   : > { %5173 = vmatprep.subr.bf16.mxu0 %v6040_v16 }
 0x792   : > { %5175 = vmatpush3.bf16.msra.mxu0 %v6285_v37 }
 0x793   : > { %5176 = vmatprep.subr.bf16.mxu0 %v6040_v16 }
 0x796   : > { %5178 = vmatpush3.bf16.msra.mxu0 %v6296_v43 }
 0x797   : > { %5179 = vmatprep.subr.bf16.mxu0 %v6040_v16 }
 0x79a   : > { %5181 = vmatpush3.bf16.msra.mxu0 %v6307_v49 }
 0x79b   : > { %5182 = vmatprep.subr.bf16.mxu0 %v6040_v16 }
 0x79e   : > { %5184 = vmatpush3.bf16.msra.mxu0 %v6335_v59 }
 0x79f   : > { %5185 = vmatprep.subr.bf16.mxu0 %v6040_v16 }
 0x7a2   : > { %5187 = vmatpush3.bf16.msra.mxu0 %v6340_v62 }
 0x7a3   : > { %5188 = vmatprep.subr.bf16.mxu0 %v6040_v16 }
 0x7a6   : > { %5190 = vmatpush3.bf16.msra.mxu0 %v6348_v1 }
 0x7a7   : > { %5215 = vmatprep.subr.bf16.mxu0 %v6040_v16 }
 0x85c   : > { %v1215_v0 = vpop.f32.mrb[6].mxu0 }
 0x85d   : > { %v1216_v2 = vadd.f32 %v1215_v0, %v6388_v13  ;;  %v4069_v3 = vpop.f32.mrb[7].mxu0 }
 0x85f   : > { %5840 = vtanh.f32 %v1216_v2 }
 0x869   : > { %v5841_v5 = vpop.eup %5840 }
 0x86a   : > { %v1295_v7 = vmul.f32 2.0, %v5841_v5  ;;  %v1220_v8 = vmul.f32 0.125, %v5841_v5 }
 0x86c   : > { %v1221_v9 = vadd.f32 %v1220_v8, %v6452_v47  ;;  %v1296_v10 = vadd.f32 %v1295_v7, %v1294_v6 }
 0x86e   : > { %4103 = vmatmul.mubr.f32.vlgmr.msra.gmra.mrb[8].mxu1 %v1221_v9 }
 0x86f   : > { %5193 = vmatpush3.bf16.msra.mxu1 %v6264_v26  ;;  %4172 = vmatprep.mubr.msk.f32.mxu1 %vm6042_vm4, %v6041_v54 }
 0x870   : > { %5194 = vmatprep.subr.bf16.mxu1 %v6040_v16 }
 0x873   : > { %5196 = vmatpush3.bf16.msra.mxu1 %v6274_v31 }
 0x874   : > { %5197 = vmatprep.subr.bf16.mxu1 %v6040_v16 }
 0x877   : > { %5199 = vmatpush3.bf16.msra.mxu1 %v6285_v37 }
 0x878   : > { %5200 = vmatprep.subr.bf16.mxu1 %v6040_v16 }
 0x87b   : > { %5202 = vmatpush3.bf16.msra.mxu1 %v6296_v43 }
 0x87c   : > { %5203 = vmatprep.subr.bf16.mxu1 %v6040_v16 }
 0x87f   : > { %5205 = vmatpush3.bf16.msra.mxu1 %v6307_v49 }
 0x880   : > { %5206 = vmatprep.subr.bf16.mxu1 %v6040_v16 }
 0x883   : > { %5208 = vmatpush3.bf16.msra.mxu1 %v6335_v59 }
 0x884   : > { %5209 = vmatprep.subr.bf16.mxu1 %v6040_v16 }
 0x887   : > { %5211 = vmatpush3.bf16.msra.mxu1 %v6340_v62 }
 0x888   : > { %5212 = vmatprep.subr.bf16.mxu1 %v6040_v16 }
 0x88b   : > { %5214 = vmatpush3.bf16.msra.mxu1 %v6348_v1 }
 0x88c   : > { %5239 = vmatprep.subr.bf16.mxu1 %v6040_v16 }
 0x941   : > { %v1288_v11 = vpop.f32.mrb[8].mxu1 }
 0x942   : > { %v1289_v12 = vadd.f32 %v1288_v11, %v6388_v13  ;;  %v4104_v14 = vpop.f32.mrb[9].mxu1 }
 0x944   : > { %5842 = vtanh.f32 %v1289_v12 }
 0x94e   : > { %v5843_v15 = vpop.eup %5842 }
 0x94f   : > { %v1297_v17 = vadd.f32 %v5843_v15, %v1296_v10 }
 0x951   : > { %v1298_v18 = vmul.f32 0.020833334, %v1297_v17 }
 0x953   : > { %v6535_v19 = vadd.f32 %v1298_v18, %v6452_v47 }
 0x955   : > { %4138 = vmatmul.mubr.f32.vlgmr.msra.gmra.mrb[8].mxu0 %v6535_v19 }
 0x956   : > { %5217 = vmatpush3.bf16.msra.mxu0 %v6264_v26  ;;  %4207 = vmatprep.mubr.msk.f32.mxu0 %vm6042_vm4, %v6041_v54 }
 0x957   : > { %5218 = vmatprep.subr.bf16.mxu0 %v6040_v16 }
 0x95a   : > { %5220 = vmatpush3.bf16.msra.mxu0 %v6274_v31 }
 0x95b   : > { %5221 = vmatprep.subr.bf16.mxu0 %v6040_v16 }
 0x95e   : > { %5223 = vmatpush3.bf16.msra.mxu0 %v6285_v37 }
 0x95f   : > { %5224 = vmatprep.subr.bf16.mxu0 %v6040_v16 }
 0x962   : > { %5226 = vmatpush3.bf16.msra.mxu0 %v6296_v43 }
 0x963   : > { %5227 = vmatprep.subr.bf16.mxu0 %v6040_v16 }
 0x966   : > { %5229 = vmatpush3.bf16.msra.mxu0 %v6307_v49 }
 0x967   : > { %5230 = vmatprep.subr.bf16.mxu0 %v6040_v16 }
 0x96a   : > { %5232 = vmatpush3.bf16.msra.mxu0 %v6335_v59 }
 0x96b   : > { %5233 = vmatprep.subr.bf16.mxu0 %v6040_v16 }
 0x96e   : > { %5235 = vmatpush3.bf16.msra.mxu0 %v6340_v62 }
 0x96f   : > { %5236 = vmatprep.subr.bf16.mxu0 %v6040_v16 }
 0x972   : > { %5238 = vmatpush3.bf16.msra.mxu0 %v6348_v1 }
 0x973   : > { %5263 = vmatprep.subr.bf16.mxu0 %v6040_v16 }
 0xa28   : > { %v1366_v20 = vpop.f32.mrb[8].mxu0 }
 0xa29   : > { %v1367_v21 = vadd.f32 %v1366_v20, %v6388_v13  ;;  %v4139_v22 = vpop.f32.mrb[9].mxu0 }
 0xa2b   : > { %5844 = vtanh.f32 %v1367_v21 }
 0xa35   : > { %v5845_v23 = vpop.eup %5844 }
 0xa36   : > { %v1371_v24 = vmul.f32 0.0625, %v5845_v23 }
 0xa38   : > { %v1372_v25 = vadd.f32 %v1371_v24, %v6535_v19 }
 0xa3a   : > { %4173 = vmatmul.mubr.f32.vlgmr.msra.gmra.mrb[10].mxu1 %v1372_v25 }
 0xa3b   : > { %5241 = vmatpush3.bf16.msra.mxu1 %v6264_v26  ;;  %4242 = vmatprep.mubr.msk.f32.mxu1 %vm6042_vm4, %v6041_v54 }
 0xa3c   : > { %5242 = vmatprep.subr.bf16.mxu1 %v6040_v16 }
 0xa3f   : > { %5244 = vmatpush3.bf16.msra.mxu1 %v6274_v31 }
 0xa40   : > { %5245 = vmatprep.subr.bf16.mxu1 %v6040_v16 }
 0xa43   : > { %5247 = vmatpush3.bf16.msra.mxu1 %v6285_v37 }
 0xa44   : > { %5248 = vmatprep.subr.bf16.mxu1 %v6040_v16 }
 0xa47   : > { %5250 = vmatpush3.bf16.msra.mxu1 %v6296_v43 }
 0xa48   : > { %5251 = vmatprep.subr.bf16.mxu1 %v6040_v16 }
 0xa4b   : > { %5253 = vmatpush3.bf16.msra.mxu1 %v6307_v49 }
 0xa4c   : > { %5254 = vmatprep.subr.bf16.mxu1 %v6040_v16 }
 0xa4f   : > { %5256 = vmatpush3.bf16.msra.mxu1 %v6335_v59 }
 0xa50   : > { %5257 = vmatprep.subr.bf16.mxu1 %v6040_v16 }
 0xa53   : > { %5259 = vmatpush3.bf16.msra.mxu1 %v6340_v62 }
 0xa54   : > { %5260 = vmatprep.subr.bf16.mxu1 %v6040_v16 }
 0xa57   : > { %5262 = vmatpush3.bf16.msra.mxu1 %v6348_v1 }
 0xa58   : > { %5287 = vmatprep.subr.bf16.mxu1 %v6040_v16 }
 0xb0d   : > { %v1439_v27 = vpop.f32.mrb[10].mxu1 }
 0xb0e   : > { %v1440_v28 = vadd.f32 %v1439_v27, %v6388_v13  ;;  %v4174_v29 = vpop.f32.mrb[11].mxu1 }
 0xb10   : > { %5846 = vtanh.f32 %v1440_v28 }
 0xb1a   : > { %v5847_v30 = vpop.eup %5846 }
 0xb1b   : > { %v1444_v32 = vmul.f32 0.0625, %v5847_v30  ;;  %v1590_v38 = vmul.f32 2.0, %v5847_v30 }
 0xb1d   : > { %v1445_v33 = vadd.f32 %v1444_v32, %v6535_v19  ;;  %v1591_v40 = vadd.f32 %v5845_v23, %v1590_v38 }
 0xb1f   : > { %4208 = vmatmul.mubr.f32.vlgmr.msra.gmra.mrb[10].mxu0 %v1445_v33 }
 0xb20   : > { %5265 = vmatpush3.bf16.msra.mxu0 %v6264_v26  ;;  %4277 = vmatprep.mubr.msk.f32.mxu0 %vm6042_vm4, %v6041_v54 }
 0xb21   : > { %5266 = vmatprep.subr.bf16.mxu0 %v6040_v16 }
 0xb24   : > { %5268 = vmatpush3.bf16.msra.mxu0 %v6274_v31 }
 0xb25   : > { %5269 = vmatprep.subr.bf16.mxu0 %v6040_v16 }
 0xb28   : > { %5271 = vmatpush3.bf16.msra.mxu0 %v6285_v37 }
 0xb29   : > { %5272 = vmatprep.subr.bf16.mxu0 %v6040_v16 }
 0xb2c   : > { %5274 = vmatpush3.bf16.msra.mxu0 %v6296_v43 }
 0xb2d   : > { %5275 = vmatprep.subr.bf16.mxu0 %v6040_v16 }
 0xb30   : > { %5277 = vmatpush3.bf16.msra.mxu0 %v6307_v49 }
 0xb31   : > { %5278 = vmatprep.subr.bf16.mxu0 %v6040_v16 }
 0xb34   : > { %5280 = vmatpush3.bf16.msra.mxu0 %v6335_v59 }
 0xb35   : > { %5281 = vmatprep.subr.bf16.mxu0 %v6040_v16 }
 0xb38   : > { %5283 = vmatpush3.bf16.msra.mxu0 %v6340_v62 }
 0xb39   : > { %5284 = vmatprep.subr.bf16.mxu0 %v6040_v16 }
 0xb3c   : > { %5286 = vmatpush3.bf16.msra.mxu0 %v6348_v1 }
 0xb3d   : > { %5311 = vmatprep.subr.bf16.mxu0 %v6040_v16 }
 0xbf2   : > { %v1512_v34 = vpop.f32.mrb[10].mxu0 }
 0xbf3   : > { %v1513_v35 = vadd.f32 %v1512_v34, %v6388_v13  ;;  %v4209_v36 = vpop.f32.mrb[11].mxu0 }
 0xbf5   : > { %5848 = vtanh.f32 %v1513_v35 }
 0xbff   : > { %v5849_v39 = vpop.eup %5848 }
 0xc00   : > { %v1592_v41 = vmul.f32 2.0, %v5849_v39  ;;  %v1517_v42 = vmul.f32 0.125, %v5849_v39 }
 0xc02   : > { %v1518_v44 = vadd.f32 %v1517_v42, %v6535_v19  ;;  %v1593_v45 = vadd.f32 %v1592_v41, %v1591_v40 }
 0xc04   : > { %4243 = vmatmul.mubr.f32.vlgmr.msra.gmra.mrb[12].mxu1 %v1518_v44 }
 0xc05   : > { %5289 = vmatpush3.bf16.msra.mxu1 %v6264_v26  ;;  %4312 = vmatprep.mubr.msk.f32.mxu1 %vm6042_vm4, %v6041_v54 }
 0xc06   : > { %5290 = vmatprep.subr.bf16.mxu1 %v6040_v16 }
 0xc09   : > { %5292 = vmatpush3.bf16.msra.mxu1 %v6274_v31 }
 0xc0a   : > { %5293 = vmatprep.subr.bf16.mxu1 %v6040_v16 }
 0xc0d   : > { %5295 = vmatpush3.bf16.msra.mxu1 %v6285_v37 }
 0xc0e   : > { %5296 = vmatprep.subr.bf16.mxu1 %v6040_v16 }
 0xc11   : > { %5298 = vmatpush3.bf16.msra.mxu1 %v6296_v43 }
 0xc12   : > { %5299 = vmatprep.subr.bf16.mxu1 %v6040_v16 }
 0xc15   : > { %5301 = vmatpush3.bf16.msra.mxu1 %v6307_v49 }
 0xc16   : > { %5302 = vmatprep.subr.bf16.mxu1 %v6040_v16 }
 0xc19   : > { %5304 = vmatpush3.bf16.msra.mxu1 %v6335_v59 }
 0xc1a   : > { %5305 = vmatprep.subr.bf16.mxu1 %v6040_v16 }
 0xc1d   : > { %5307 = vmatpush3.bf16.msra.mxu1 %v6340_v62 }
 0xc1e   : > { %5308 = vmatprep.subr.bf16.mxu1 %v6040_v16 }
 0xc21   : > { %5310 = vmatpush3.bf16.msra.mxu1 %v6348_v1 }
 0xc22   : > { %5335 = vmatprep.subr.bf16.mxu1 %v6040_v16 }
 0xcd7   : > { %v1585_v46 = vpop.f32.mrb[12].mxu1 }
 0xcd8   : > { %v1586_v47 = vadd.f32 %v1585_v46, %v6388_v13  ;;  %v4244_v48 = vpop.f32.mrb[13].mxu1 }
 0xcda   : > { %5850 = vtanh.f32 %v1586_v47 }
 0xce4   : > { %v5851_v50 = vpop.eup %5850 }
 0xce5   : > { %v1594_v51 = vadd.f32 %v5851_v50, %v1593_v45 }
 0xce7   : > { %v1595_v52 = vmul.f32 0.020833334, %v1594_v51 }
 0xce9   : > { %v6618_v53 = vadd.f32 %v1595_v52, %v6535_v19 }
 0xceb   : > { %4278 = vmatmul.mubr.f32.vlgmr.msra.gmra.mrb[12].mxu0 %v6618_v53 }
 0xcec   : > { %5313 = vmatpush3.bf16.msra.mxu0 %v6264_v26  ;;  %4347 = vmatprep.mubr.msk.f32.mxu0 %vm6042_vm4, %v6041_v54 }
 0xced   : > { %5314 = vmatprep.subr.bf16.mxu0 %v6040_v16 }
 0xcf0   : > { %5316 = vmatpush3.bf16.msra.mxu0 %v6274_v31 }
 0xcf1   : > { %5317 = vmatprep.subr.bf16.mxu0 %v6040_v16 }
 0xcf4   : > { %5319 = vmatpush3.bf16.msra.mxu0 %v6285_v37 }
 0xcf5   : > { %5320 = vmatprep.subr.bf16.mxu0 %v6040_v16 }
 0xcf8   : > { %5322 = vmatpush3.bf16.msra.mxu0 %v6296_v43 }
 0xcf9   : > { %5323 = vmatprep.subr.bf16.mxu0 %v6040_v16 }
 0xcfc   : > { %5325 = vmatpush3.bf16.msra.mxu0 %v6307_v49 }
 0xcfd   : > { %5326 = vmatprep.subr.bf16.mxu0 %v6040_v16 }
 0xd00   : > { %5328 = vmatpush3.bf16.msra.mxu0 %v6335_v59 }
 0xd01   : > { %5329 = vmatprep.subr.bf16.mxu0 %v6040_v16 }
 0xd04   : > { %5331 = vmatpush3.bf16.msra.mxu0 %v6340_v62 }
 0xd05   : > { %5332 = vmatprep.subr.bf16.mxu0 %v6040_v16 }
 0xd08   : > { %5334 = vmatpush3.bf16.msra.mxu0 %v6348_v1 }
 0xd09   : > { %5359 = vmatprep.subr.bf16.mxu0 %v6040_v16 }
 0xdbe   : > { %v1663_v55 = vpop.f32.mrb[12].mxu0 }
 0xdbf   : > { %v1664_v56 = vadd.f32 %v1663_v55, %v6388_v13  ;;  %v4279_v57 = vpop.f32.mrb[13].mxu0 }
 0xdc1   : > { %5852 = vtanh.f32 %v1664_v56 }
 0xdcb   : > { %v5853_v58 = vpop.eup %5852 }
 0xdcc   : > { %v1668_v60 = vmul.f32 0.0625, %v5853_v58 }
 0xdce   : > { %v1669_v61 = vadd.f32 %v1668_v60, %v6618_v53 }
 0xdd0   : > { %4313 = vmatmul.mubr.f32.vlgmr.msra.gmra.mrb[14].mxu1 %v1669_v61 }
 0xdd1   : > { %5337 = vmatpush3.bf16.msra.mxu1 %v6264_v26  ;;  %4382 = vmatprep.mubr.msk.f32.mxu1 %vm6042_vm4, %v6041_v54 }
 0xdd2   : > { %5338 = vmatprep.subr.bf16.mxu1 %v6040_v16 }
 0xdd5   : > { %5340 = vmatpush3.bf16.msra.mxu1 %v6274_v31 }
 0xdd6   : > { %5341 = vmatprep.subr.bf16.mxu1 %v6040_v16 }
 0xdd9   : > { %5343 = vmatpush3.bf16.msra.mxu1 %v6285_v37 }
 0xdda   : > { %5344 = vmatprep.subr.bf16.mxu1 %v6040_v16 }
 0xddd   : > { %5346 = vmatpush3.bf16.msra.mxu1 %v6296_v43 }
 0xdde   : > { %5347 = vmatprep.subr.bf16.mxu1 %v6040_v16 }
 0xde1   : > { %5349 = vmatpush3.bf16.msra.mxu1 %v6307_v49 }
 0xde2   : > { %5350 = vmatprep.subr.bf16.mxu1 %v6040_v16 }
 0xde5   : > { %5352 = vmatpush3.bf16.msra.mxu1 %v6335_v59 }
 0xde6   : > { %5353 = vmatprep.subr.bf16.mxu1 %v6040_v16 }
 0xde9   : > { %5355 = vmatpush3.bf16.msra.mxu1 %v6340_v62 }
 0xdea   : > { %5356 = vmatprep.subr.bf16.mxu1 %v6040_v16 }
 0xded   : > { %5358 = vmatpush3.bf16.msra.mxu1 %v6348_v1 }
 0xdee   : > { %5383 = vmatprep.subr.bf16.mxu1 %v6040_v16 }
 0xea3   : > { %v1736_v63 = vpop.f32.mrb[14].mxu1 }
 0xea4   : > { %v1737_v0 = vadd.f32 %v1736_v63, %v6388_v13  ;;  %v4314_v2 = vpop.f32.mrb[15].mxu1 }
 0xea6   : > { %5854 = vtanh.f32 %v1737_v0 }
 0xeb0   : > { %v5855_v3 = vpop.eup %5854 }
 0xeb1   : > { %v1741_v4 = vmul.f32 0.0625, %v5855_v3  ;;  %v1887_v9 = vmul.f32 2.0, %v5855_v3 }
 0xeb3   : > { %v1742_v5 = vadd.f32 %v1741_v4, %v6618_v53  ;;  %v1888_v11 = vadd.f32 %v5853_v58, %v1887_v9 }
 0xeb5   : > { %4348 = vmatmul.mubr.f32.vlgmr.msra.gmra.mrb[14].mxu0 %v1742_v5 }
 0xeb6   : > { %5361 = vmatpush3.bf16.msra.mxu0 %v6264_v26  ;;  %4417 = vmatprep.mubr.msk.f32.mxu0 %vm6042_vm4, %v6041_v54 }
 0xeb7   : > { %5362 = vmatprep.subr.bf16.mxu0 %v6040_v16 }
 0xeba   : > { %5364 = vmatpush3.bf16.msra.mxu0 %v6274_v31 }
 0xebb   : > { %5365 = vmatprep.subr.bf16.mxu0 %v6040_v16 }
 0xebe   : > { %5367 = vmatpush3.bf16.msra.mxu0 %v6285_v37 }
 0xebf   : > { %5368 = vmatprep.subr.bf16.mxu0 %v6040_v16 }
 0xec2   : > { %5370 = vmatpush3.bf16.msra.mxu0 %v6296_v43 }
 0xec3   : > { %5371 = vmatprep.subr.bf16.mxu0 %v6040_v16 }
 0xec6   : > { %5373 = vmatpush3.bf16.msra.mxu0 %v6307_v49 }
 0xec7   : > { %5374 = vmatprep.subr.bf16.mxu0 %v6040_v16 }
 0xeca   : > { %5376 = vmatpush3.bf16.msra.mxu0 %v6335_v59 }
 0xecb   : > { %5377 = vmatprep.subr.bf16.mxu0 %v6040_v16 }
 0xece   : > { %5379 = vmatpush3.bf16.msra.mxu0 %v6340_v62 }
 0xecf   : > { %5380 = vmatprep.subr.bf16.mxu0 %v6040_v16 }
 0xed2   : > { %5382 = vmatpush3.bf16.msra.mxu0 %v6348_v1 }
 0xed3   : > { %5407 = vmatprep.subr.bf16.mxu0 %v6040_v16 }
 0xf88   : > { %v1809_v6 = vpop.f32.mrb[14].mxu0 }
 0xf89   : > { %v1810_v7 = vadd.f32 %v1809_v6, %v6388_v13  ;;  %v4349_v8 = vpop.f32.mrb[15].mxu0 }
 0xf8b   : > { %5856 = vtanh.f32 %v1810_v7 }
 0xf95   : > { %v5857_v10 = vpop.eup %5856 }
 0xf96   : > { %v1889_v12 = vmul.f32 2.0, %v5857_v10  ;;  %v1814_v14 = vmul.f32 0.125, %v5857_v10 }
 0xf98   : > { %v1815_v15 = vadd.f32 %v1814_v14, %v6618_v53  ;;  %v1890_v17 = vadd.f32 %v1889_v12, %v1888_v11 }
 0xf9a   : > { %4383 = vmatmul.mubr.f32.vlgmr.msra.gmra.mrb[16].mxu1 %v1815_v15 }
 0xf9b   : > { %5385 = vmatpush3.bf16.msra.mxu1 %v6264_v26  ;;  %4452 = vmatprep.mubr.msk.f32.mxu1 %vm6042_vm4, %v6041_v54 }
 0xf9c   : > { %5386 = vmatprep.subr.bf16.mxu1 %v6040_v16 }
 0xf9f   : > { %5388 = vmatpush3.bf16.msra.mxu1 %v6274_v31 }
 0xfa0   : > { %5389 = vmatprep.subr.bf16.mxu1 %v6040_v16 }
 0xfa3   : > { %5391 = vmatpush3.bf16.msra.mxu1 %v6285_v37 }
 0xfa4   : > { %5392 = vmatprep.subr.bf16.mxu1 %v6040_v16 }
 0xfa7   : > { %5394 = vmatpush3.bf16.msra.mxu1 %v6296_v43 }
 0xfa8   : > { %5395 = vmatprep.subr.bf16.mxu1 %v6040_v16 }
 0xfab   : > { %5397 = vmatpush3.bf16.msra.mxu1 %v6307_v49 }
 0xfac   : > { %5398 = vmatprep.subr.bf16.mxu1 %v6040_v16 }
 0xfaf   : > { %5400 = vmatpush3.bf16.msra.mxu1 %v6335_v59 }
 0xfb0   : > { %5401 = vmatprep.subr.bf16.mxu1 %v6040_v16 }
 0xfb3   : > { %5403 = vmatpush3.bf16.msra.mxu1 %v6340_v62 }
 0xfb4   : > { %5404 = vmatprep.subr.bf16.mxu1 %v6040_v16 }
 0xfb7   : > { %5406 = vmatpush3.bf16.msra.mxu1 %v6348_v1 }
 0xfb8   : > { %5431 = vmatprep.subr.bf16.mxu1 %v6040_v16 }
0x106d   : > { %v1882_v18 = vpop.f32.mrb[16].mxu1 }
0x106e   : > { %v1883_v19 = vadd.f32 %v1882_v18, %v6388_v13  ;;  %v4384_v20 = vpop.f32.mrb[17].mxu1 }
0x1070   : > { %5858 = vtanh.f32 %v1883_v19 }
0x107a   : > { %v5859_v21 = vpop.eup %5858 }
0x107b   : > { %v1891_v22 = vadd.f32 %v5859_v21, %v1890_v17 }
0x107d   : > { %v1892_v23 = vmul.f32 0.020833334, %v1891_v22 }
0x107f   : > { %v6701_v24 = vadd.f32 %v1892_v23, %v6618_v53 }
0x1081   : > { %4418 = vmatmul.mubr.f32.vlgmr.msra.gmra.mrb[16].mxu0 %v6701_v24 }
0x1082   : > { %5409 = vmatpush3.bf16.msra.mxu0 %v6264_v26  ;;  %4487 = vmatprep.mubr.msk.f32.mxu0 %vm6042_vm4, %v6041_v54 }
0x1083   : > { %5410 = vmatprep.subr.bf16.mxu0 %v6040_v16 }
0x1086   : > { %5412 = vmatpush3.bf16.msra.mxu0 %v6274_v31 }
0x1087   : > { %5413 = vmatprep.subr.bf16.mxu0 %v6040_v16 }
0x108a   : > { %5415 = vmatpush3.bf16.msra.mxu0 %v6285_v37 }
0x108b   : > { %5416 = vmatprep.subr.bf16.mxu0 %v6040_v16 }
0x108e   : > { %5418 = vmatpush3.bf16.msra.mxu0 %v6296_v43 }
0x108f   : > { %5419 = vmatprep.subr.bf16.mxu0 %v6040_v16 }
0x1092   : > { %5421 = vmatpush3.bf16.msra.mxu0 %v6307_v49 }
0x1093   : > { %5422 = vmatprep.subr.bf16.mxu0 %v6040_v16 }
0x1096   : > { %5424 = vmatpush3.bf16.msra.mxu0 %v6335_v59 }
0x1097   : > { %5425 = vmatprep.subr.bf16.mxu0 %v6040_v16 }
0x109a   : > { %5427 = vmatpush3.bf16.msra.mxu0 %v6340_v62 }
0x109b   : > { %5428 = vmatprep.subr.bf16.mxu0 %v6040_v16 }
0x109e   : > { %5430 = vmatpush3.bf16.msra.mxu0 %v6348_v1 }
0x109f   : > { %5455 = vmatprep.subr.bf16.mxu0 %v6040_v16 }
0x1154   : > { %v1960_v25 = vpop.f32.mrb[16].mxu0 }
0x1155   : > { %v1961_v27 = vadd.f32 %v1960_v25, %v6388_v13  ;;  %v4419_v28 = vpop.f32.mrb[17].mxu0 }
0x1157   : > { %5860 = vtanh.f32 %v1961_v27 }
0x1161   : > { %v5861_v29 = vpop.eup %5860 }
0x1162   : > { %v1965_v30 = vmul.f32 0.0625, %v5861_v29 }
0x1164   : > { %v1966_v32 = vadd.f32 %v1965_v30, %v6701_v24 }
0x1166   : > { %4453 = vmatmul.mubr.f32.vlgmr.msra.gmra.mrb[18].mxu1 %v1966_v32 }
0x1167   : > { %5433 = vmatpush3.bf16.msra.mxu1 %v6264_v26  ;;  %4522 = vmatprep.mubr.msk.f32.mxu1 %vm6042_vm4, %v6041_v54 }
0x1168   : > { %5434 = vmatprep.subr.bf16.mxu1 %v6040_v16 }
0x116b   : > { %5436 = vmatpush3.bf16.msra.mxu1 %v6274_v31 }
0x116c   : > { %5437 = vmatprep.subr.bf16.mxu1 %v6040_v16 }
0x116f   : > { %5439 = vmatpush3.bf16.msra.mxu1 %v6285_v37 }
0x1170   : > { %5440 = vmatprep.subr.bf16.mxu1 %v6040_v16 }
0x1173   : > { %5442 = vmatpush3.bf16.msra.mxu1 %v6296_v43 }
0x1174   : > { %5443 = vmatprep.subr.bf16.mxu1 %v6040_v16 }
0x1177   : > { %5445 = vmatpush3.bf16.msra.mxu1 %v6307_v49 }
0x1178   : > { %5446 = vmatprep.subr.bf16.mxu1 %v6040_v16 }
0x117b   : > { %5448 = vmatpush3.bf16.msra.mxu1 %v6335_v59 }
0x117c   : > { %5449 = vmatprep.subr.bf16.mxu1 %v6040_v16 }
0x117f   : > { %5451 = vmatpush3.bf16.msra.mxu1 %v6340_v62 }
0x1180   : > { %5452 = vmatprep.subr.bf16.mxu1 %v6040_v16 }
0x1183   : > { %5454 = vmatpush3.bf16.msra.mxu1 %v6348_v1 }
0x1184   : > { %5479 = vmatprep.subr.bf16.mxu1 %v6040_v16 }
0x1239   : > { %v2033_v33 = vpop.f32.mrb[18].mxu1 }
0x123a   : > { %v2034_v34 = vadd.f32 %v2033_v33, %v6388_v13  ;;  %v4454_v35 = vpop.f32.mrb[19].mxu1 }
0x123c   : > { %5862 = vtanh.f32 %v2034_v34 }
0x1246   : > { %v5863_v36 = vpop.eup %5862 }
0x1247   : > { %v2038_v38 = vmul.f32 0.0625, %v5863_v36  ;;  %v2184_v44 = vmul.f32 2.0, %v5863_v36 }
0x1249   : > { %v2039_v39 = vadd.f32 %v2038_v38, %v6701_v24  ;;  %v2185_v46 = vadd.f32 %v5861_v29, %v2184_v44 }
0x124b   : > { %4488 = vmatmul.mubr.f32.vlgmr.msra.gmra.mrb[18].mxu0 %v2039_v39 }
0x124c   : > { %5457 = vmatpush3.bf16.msra.mxu0 %v6264_v26  ;;  %4557 = vmatprep.mubr.msk.f32.mxu0 %vm6042_vm4, %v6041_v54 }
0x124d   : > { %5458 = vmatprep.subr.bf16.mxu0 %v6040_v16 }
0x1250   : > { %5460 = vmatpush3.bf16.msra.mxu0 %v6274_v31 }
0x1251   : > { %5461 = vmatprep.subr.bf16.mxu0 %v6040_v16 }
0x1254   : > { %5463 = vmatpush3.bf16.msra.mxu0 %v6285_v37 }
0x1255   : > { %5464 = vmatprep.subr.bf16.mxu0 %v6040_v16 }
0x1258   : > { %5466 = vmatpush3.bf16.msra.mxu0 %v6296_v43 }
0x1259   : > { %5467 = vmatprep.subr.bf16.mxu0 %v6040_v16 }
0x125c   : > { %5469 = vmatpush3.bf16.msra.mxu0 %v6307_v49 }
0x125d   : > { %5470 = vmatprep.subr.bf16.mxu0 %v6040_v16 }
0x1260   : > { %5472 = vmatpush3.bf16.msra.mxu0 %v6335_v59 }
0x1261   : > { %5473 = vmatprep.subr.bf16.mxu0 %v6040_v16 }
0x1264   : > { %5475 = vmatpush3.bf16.msra.mxu0 %v6340_v62 }
0x1265   : > { %5476 = vmatprep.subr.bf16.mxu0 %v6040_v16 }
0x1268   : > { %5478 = vmatpush3.bf16.msra.mxu0 %v6348_v1 }
0x1269   : > { %5503 = vmatprep.subr.bf16.mxu0 %v6040_v16 }
0x131e   : > { %v2106_v40 = vpop.f32.mrb[18].mxu0 }
0x131f   : > { %v2107_v41 = vadd.f32 %v2106_v40, %v6388_v13  ;;  %v4489_v42 = vpop.f32.mrb[19].mxu0 }
0x1321   : > { %5864 = vtanh.f32 %v2107_v41 }
0x132b   : > { %v5865_v45 = vpop.eup %5864 }
0x132c   : > { %v2186_v47 = vmul.f32 2.0, %v5865_v45  ;;  %v2111_v48 = vmul.f32 0.125, %v5865_v45 }
0x132e   : > { %v2112_v50 = vadd.f32 %v2111_v48, %v6701_v24  ;;  %v2187_v51 = vadd.f32 %v2186_v47, %v2185_v46 }
0x1330   : > { %4523 = vmatmul.mubr.f32.vlgmr.msra.gmra.mrb[20].mxu1 %v2112_v50 }
0x1331   : > { %5481 = vmatpush3.bf16.msra.mxu1 %v6264_v26  ;;  %4592 = vmatprep.mubr.msk.f32.mxu1 %vm6042_vm4, %v6041_v54 }
0x1332   : > { %5482 = vmatprep.subr.bf16.mxu1 %v6040_v16 }
0x1335   : > { %5484 = vmatpush3.bf16.msra.mxu1 %v6274_v31 }
0x1336   : > { %5485 = vmatprep.subr.bf16.mxu1 %v6040_v16 }
0x1339   : > { %5487 = vmatpush3.bf16.msra.mxu1 %v6285_v37 }
0x133a   : > { %5488 = vmatprep.subr.bf16.mxu1 %v6040_v16 }
0x133d   : > { %5490 = vmatpush3.bf16.msra.mxu1 %v6296_v43 }
0x133e   : > { %5491 = vmatprep.subr.bf16.mxu1 %v6040_v16 }
0x1341   : > { %5493 = vmatpush3.bf16.msra.mxu1 %v6307_v49 }
0x1342   : > { %5494 = vmatprep.subr.bf16.mxu1 %v6040_v16 }
0x1345   : > { %5496 = vmatpush3.bf16.msra.mxu1 %v6335_v59 }
0x1346   : > { %5497 = vmatprep.subr.bf16.mxu1 %v6040_v16 }
0x1349   : > { %5499 = vmatpush3.bf16.msra.mxu1 %v6340_v62 }
0x134a   : > { %5500 = vmatprep.subr.bf16.mxu1 %v6040_v16 }
0x134d   : > { %5502 = vmatpush3.bf16.msra.mxu1 %v6348_v1 }
0x134e   : > { %5527 = vmatprep.subr.bf16.mxu1 %v6040_v16 }
0x1403   : > { %v2179_v52 = vpop.f32.mrb[20].mxu1 }
0x1404   : > { %v2180_v53 = vadd.f32 %v2179_v52, %v6388_v13  ;;  %v4524_v55 = vpop.f32.mrb[21].mxu1 }
0x1406   : > { %5866 = vtanh.f32 %v2180_v53 }
0x1410   : > { %v5867_v56 = vpop.eup %5866 }
0x1411   : > { %v2188_v57 = vadd.f32 %v5867_v56, %v2187_v51 }
0x1413   : > { %v2189_v58 = vmul.f32 0.020833334, %v2188_v57 }
0x1415   : > { %v6784_v60 = vadd.f32 %v2189_v58, %v6701_v24 }
0x1417   : > { %4558 = vmatmul.mubr.f32.vlgmr.msra.gmra.mrb[20].mxu0 %v6784_v60 }
0x1418   : > { %5505 = vmatpush3.bf16.msra.mxu0 %v6264_v26  ;;  %4627 = vmatprep.mubr.msk.f32.mxu0 %vm6042_vm4, %v6041_v54 }
0x1419   : > { %5506 = vmatprep.subr.bf16.mxu0 %v6040_v16 }
0x141c   : > { %5508 = vmatpush3.bf16.msra.mxu0 %v6274_v31 }
0x141d   : > { %5509 = vmatprep.subr.bf16.mxu0 %v6040_v16 }
0x1420   : > { %5511 = vmatpush3.bf16.msra.mxu0 %v6285_v37 }
0x1421   : > { %5512 = vmatprep.subr.bf16.mxu0 %v6040_v16 }
0x1424   : > { %5514 = vmatpush3.bf16.msra.mxu0 %v6296_v43 }
0x1425   : > { %5515 = vmatprep.subr.bf16.mxu0 %v6040_v16 }
0x1428   : > { %5517 = vmatpush3.bf16.msra.mxu0 %v6307_v49 }
0x1429   : > { %5518 = vmatprep.subr.bf16.mxu0 %v6040_v16 }
0x142c   : > { %5520 = vmatpush3.bf16.msra.mxu0 %v6335_v59 }
0x142d   : > { %5521 = vmatprep.subr.bf16.mxu0 %v6040_v16 }
0x1430   : > { %5523 = vmatpush3.bf16.msra.mxu0 %v6340_v62 }
0x1431   : > { %5524 = vmatprep.subr.bf16.mxu0 %v6040_v16 }
0x1434   : > { %5526 = vmatpush3.bf16.msra.mxu0 %v6348_v1 }
0x1435   : > { %5551 = vmatprep.subr.bf16.mxu0 %v6040_v16 }
0x14ea   : > { %v2257_v61 = vpop.f32.mrb[20].mxu0 }
0x14eb   : > { %v2258_v63 = vadd.f32 %v2257_v61, %v6388_v13  ;;  %v4559_v0 = vpop.f32.mrb[21].mxu0 }
0x14ed   : > { %5868 = vtanh.f32 %v2258_v63 }
0x14f7   : > { %v5869_v2 = vpop.eup %5868 }
0x14f8   : > { %v2262_v3 = vmul.f32 0.0625, %v5869_v2 }
0x14fa   : > { %v2263_v4 = vadd.f32 %v2262_v3, %v6784_v60 }
0x14fc   : > { %4593 = vmatmul.mubr.f32.vlgmr.msra.gmra.mrb[22].mxu1 %v2263_v4 }
0x14fd   : > { %5529 = vmatpush3.bf16.msra.mxu1 %v6264_v26  ;;  %4662 = vmatprep.mubr.msk.f32.mxu1 %vm6042_vm4, %v6041_v54 }
0x14fe   : > { %5530 = vmatprep.subr.bf16.mxu1 %v6040_v16 }
0x1501   : > { %5532 = vmatpush3.bf16.msra.mxu1 %v6274_v31 }
0x1502   : > { %5533 = vmatprep.subr.bf16.mxu1 %v6040_v16 }
0x1505   : > { %5535 = vmatpush3.bf16.msra.mxu1 %v6285_v37 }
0x1506   : > { %5536 = vmatprep.subr.bf16.mxu1 %v6040_v16 }
0x1509   : > { %5538 = vmatpush3.bf16.msra.mxu1 %v6296_v43 }
0x150a   : > { %5539 = vmatprep.subr.bf16.mxu1 %v6040_v16 }
0x150d   : > { %5541 = vmatpush3.bf16.msra.mxu1 %v6307_v49 }
0x150e   : > { %5542 = vmatprep.subr.bf16.mxu1 %v6040_v16 }
0x1511   : > { %5544 = vmatpush3.bf16.msra.mxu1 %v6335_v59 }
0x1512   : > { %5545 = vmatprep.subr.bf16.mxu1 %v6040_v16 }
0x1515   : > { %5547 = vmatpush3.bf16.msra.mxu1 %v6340_v62 }
0x1516   : > { %5548 = vmatprep.subr.bf16.mxu1 %v6040_v16 }
0x1519   : > { %5550 = vmatpush3.bf16.msra.mxu1 %v6348_v1 }
0x151a   : > { %5575 = vmatprep.subr.bf16.mxu1 %v6040_v16 }
0x15cf   : > { %v2330_v5 = vpop.f32.mrb[22].mxu1 }
0x15d0   : > { %v2331_v6 = vadd.f32 %v2330_v5, %v6388_v13  ;;  %v4594_v7 = vpop.f32.mrb[23].mxu1 }
0x15d2   : > { %5870 = vtanh.f32 %v2331_v6 }
0x15dc   : > { %v5871_v8 = vpop.eup %5870 }
0x15dd   : > { %v2335_v9 = vmul.f32 0.0625, %v5871_v8  ;;  %v2481_v15 = vmul.f32 2.0, %v5871_v8 }
0x15df   : > { %v2336_v10 = vadd.f32 %v2335_v9, %v6784_v60  ;;  %v2482_v18 = vadd.f32 %v5869_v2, %v2481_v15 }
0x15e1   : > { %4628 = vmatmul.mubr.f32.vlgmr.msra.gmra.mrb[22].mxu0 %v2336_v10 }
0x15e2   : > { %5553 = vmatpush3.bf16.msra.mxu0 %v6264_v26  ;;  %4697 = vmatprep.mubr.msk.f32.mxu0 %vm6042_vm4, %v6041_v54 }
0x15e3   : > { %5554 = vmatprep.subr.bf16.mxu0 %v6040_v16 }
0x15e6   : > { %5556 = vmatpush3.bf16.msra.mxu0 %v6274_v31 }
0x15e7   : > { %5557 = vmatprep.subr.bf16.mxu0 %v6040_v16 }
0x15ea   : > { %5559 = vmatpush3.bf16.msra.mxu0 %v6285_v37 }
0x15eb   : > { %5560 = vmatprep.subr.bf16.mxu0 %v6040_v16 }
0x15ee   : > { %5562 = vmatpush3.bf16.msra.mxu0 %v6296_v43 }
0x15ef   : > { %5563 = vmatprep.subr.bf16.mxu0 %v6040_v16 }
0x15f2   : > { %5565 = vmatpush3.bf16.msra.mxu0 %v6307_v49 }
0x15f3   : > { %5566 = vmatprep.subr.bf16.mxu0 %v6040_v16 }
0x15f6   : > { %5568 = vmatpush3.bf16.msra.mxu0 %v6335_v59 }
0x15f7   : > { %5569 = vmatprep.subr.bf16.mxu0 %v6040_v16 }
0x15fa   : > { %5571 = vmatpush3.bf16.msra.mxu0 %v6340_v62 }
0x15fb   : > { %5572 = vmatprep.subr.bf16.mxu0 %v6040_v16 }
0x15fe   : > { %5574 = vmatpush3.bf16.msra.mxu0 %v6348_v1 }
0x15ff   : > { %5599 = vmatprep.subr.bf16.mxu0 %v6040_v16 }
0x16b4   : > { %v2403_v11 = vpop.f32.mrb[22].mxu0 }
0x16b5   : > { %v2404_v12 = vadd.f32 %v2403_v11, %v6388_v13  ;;  %v4629_v14 = vpop.f32.mrb[23].mxu0 }
0x16b7   : > { %5872 = vtanh.f32 %v2404_v12 }
0x16c1   : > { %v5873_v17 = vpop.eup %5872 }
0x16c2   : > { %v2483_v19 = vmul.f32 2.0, %v5873_v17  ;;  %v2408_v20 = vmul.f32 0.125, %v5873_v17 }
0x16c4   : > { %v2409_v21 = vadd.f32 %v2408_v20, %v6784_v60  ;;  %v2484_v22 = vadd.f32 %v2483_v19, %v2482_v18 }
0x16c6   : > { %4663 = vmatmul.mubr.f32.vlgmr.msra.gmra.mrb[24].mxu1 %v2409_v21 }
0x16c7   : > { %5577 = vmatpush3.bf16.msra.mxu1 %v6264_v26  ;;  %4732 = vmatprep.mubr.msk.f32.mxu1 %vm6042_vm4, %v6041_v54 }
0x16c8   : > { %5578 = vmatprep.subr.bf16.mxu1 %v6040_v16 }
0x16cb   : > { %5580 = vmatpush3.bf16.msra.mxu1 %v6274_v31 }
0x16cc   : > { %5581 = vmatprep.subr.bf16.mxu1 %v6040_v16 }
0x16cf   : > { %5583 = vmatpush3.bf16.msra.mxu1 %v6285_v37 }
0x16d0   : > { %5584 = vmatprep.subr.bf16.mxu1 %v6040_v16 }
0x16d3   : > { %5586 = vmatpush3.bf16.msra.mxu1 %v6296_v43 }
0x16d4   : > { %5587 = vmatprep.subr.bf16.mxu1 %v6040_v16 }
0x16d7   : > { %5589 = vmatpush3.bf16.msra.mxu1 %v6307_v49 }
0x16d8   : > { %5590 = vmatprep.subr.bf16.mxu1 %v6040_v16 }
0x16db   : > { %5592 = vmatpush3.bf16.msra.mxu1 %v6335_v59 }
0x16dc   : > { %5593 = vmatprep.subr.bf16.mxu1 %v6040_v16 }
0x16df   : > { %5595 = vmatpush3.bf16.msra.mxu1 %v6340_v62 }
0x16e0   : > { %5596 = vmatprep.subr.bf16.mxu1 %v6040_v16 }
0x16e3   : > { %5598 = vmatpush3.bf16.msra.mxu1 %v6348_v1 }
0x16e4   : > { %5623 = vmatprep.subr.bf16.mxu1 %v6040_v16 }
0x1799   : > { %v2476_v23 = vpop.f32.mrb[24].mxu1 }
0x179a   : > { %v2477_v24 = vadd.f32 %v2476_v23, %v6388_v13  ;;  %v4664_v25 = vpop.f32.mrb[25].mxu1 }
0x179c   : > { %5874 = vtanh.f32 %v2477_v24 }
0x17a6   : > { %v5875_v27 = vpop.eup %5874 }
0x17a7   : > { %v2485_v28 = vadd.f32 %v5875_v27, %v2484_v22 }
0x17a9   : > { %v2486_v29 = vmul.f32 0.020833334, %v2485_v28 }
0x17ab   : > { %v6867_v30 = vadd.f32 %v2486_v29, %v6784_v60 }
0x17ad   : > { %4698 = vmatmul.mubr.f32.vlgmr.msra.gmra.mrb[24].mxu0 %v6867_v30 }
0x17ae   : > { %5601 = vmatpush3.bf16.msra.mxu0 %v6264_v26  ;;  %4767 = vmatprep.mubr.msk.f32.mxu0 %vm6042_vm4, %v6041_v54 }
0x17af   : > { %5602 = vmatprep.subr.bf16.mxu0 %v6040_v16 }
0x17b2   : > { %5604 = vmatpush3.bf16.msra.mxu0 %v6274_v31 }
0x17b3   : > { %5605 = vmatprep.subr.bf16.mxu0 %v6040_v16 }
0x17b6   : > { %5607 = vmatpush3.bf16.msra.mxu0 %v6285_v37 }
0x17b7   : > { %5608 = vmatprep.subr.bf16.mxu0 %v6040_v16 }
0x17ba   : > { %5610 = vmatpush3.bf16.msra.mxu0 %v6296_v43 }
0x17bb   : > { %5611 = vmatprep.subr.bf16.mxu0 %v6040_v16 }
0x17be   : > { %5613 = vmatpush3.bf16.msra.mxu0 %v6307_v49 }
0x17bf   : > { %5614 = vmatprep.subr.bf16.mxu0 %v6040_v16 }
0x17c2   : > { %5616 = vmatpush3.bf16.msra.mxu0 %v6335_v59 }
0x17c3   : > { %5617 = vmatprep.subr.bf16.mxu0 %v6040_v16 }
0x17c6   : > { %5619 = vmatpush3.bf16.msra.mxu0 %v6340_v62 }
0x17c7   : > { %5620 = vmatprep.subr.bf16.mxu0 %v6040_v16 }
0x17ca   : > { %5622 = vmatpush3.bf16.msra.mxu0 %v6348_v1 }
0x17cb   : > { %5647 = vmatprep.subr.bf16.mxu0 %v6040_v16 }
0x1880   : > { %v2554_v32 = vpop.f32.mrb[24].mxu0 }
0x1881   : > { %v2555_v33 = vadd.f32 %v2554_v32, %v6388_v13  ;;  %v4699_v34 = vpop.f32.mrb[25].mxu0 }
0x1883   : > { %5876 = vtanh.f32 %v2555_v33 }
0x188d   : > { %v5877_v35 = vpop.eup %5876 }
0x188e   : > { %v2559_v36 = vmul.f32 0.0625, %v5877_v35 }
0x1890   : > { %v2560_v38 = vadd.f32 %v2559_v36, %v6867_v30 }
0x1892   : > { %4733 = vmatmul.mubr.f32.vlgmr.msra.gmra.mrb[26].mxu1 %v2560_v38 }
0x1893   : > { %5625 = vmatpush3.bf16.msra.mxu1 %v6264_v26  ;;  %4802 = vmatprep.mubr.msk.f32.mxu1 %vm6042_vm4, %v6041_v54 }
0x1894   : > { %5626 = vmatprep.subr.bf16.mxu1 %v6040_v16 }
0x1897   : > { %5628 = vmatpush3.bf16.msra.mxu1 %v6274_v31 }
0x1898   : > { %5629 = vmatprep.subr.bf16.mxu1 %v6040_v16 }
0x189b   : > { %5631 = vmatpush3.bf16.msra.mxu1 %v6285_v37 }
0x189c   : > { %5632 = vmatprep.subr.bf16.mxu1 %v6040_v16 }
0x189f   : > { %5634 = vmatpush3.bf16.msra.mxu1 %v6296_v43 }
0x18a0   : > { %5635 = vmatprep.subr.bf16.mxu1 %v6040_v16 }
0x18a3   : > { %5637 = vmatpush3.bf16.msra.mxu1 %v6307_v49 }
0x18a4   : > { %5638 = vmatprep.subr.bf16.mxu1 %v6040_v16 }
0x18a7   : > { %5640 = vmatpush3.bf16.msra.mxu1 %v6335_v59 }
0x18a8   : > { %5641 = vmatprep.subr.bf16.mxu1 %v6040_v16 }
0x18ab   : > { %5643 = vmatpush3.bf16.msra.mxu1 %v6340_v62 }
0x18ac   : > { %5644 = vmatprep.subr.bf16.mxu1 %v6040_v16 }
0x18af   : > { %5646 = vmatpush3.bf16.msra.mxu1 %v6348_v1 }
0x18b0   : > { %5671 = vmatprep.subr.bf16.mxu1 %v6040_v16 }
0x1965   : > { %v2627_v39 = vpop.f32.mrb[26].mxu1 }
0x1966   : > { %v2628_v40 = vadd.f32 %v2627_v39, %v6388_v13  ;;  %v4734_v41 = vpop.f32.mrb[27].mxu1 }
0x1968   : > { %5878 = vtanh.f32 %v2628_v40 }
0x1972   : > { %v5879_v42 = vpop.eup %5878 }
0x1973   : > { %v2632_v44 = vmul.f32 0.0625, %v5879_v42  ;;  %v2778_v50 = vmul.f32 2.0, %v5879_v42 }
0x1975   : > { %v2633_v45 = vadd.f32 %v2632_v44, %v6867_v30  ;;  %v2779_v52 = vadd.f32 %v5877_v35, %v2778_v50 }
0x1977   : > { %4768 = vmatmul.mubr.f32.vlgmr.msra.gmra.mrb[26].mxu0 %v2633_v45 }
0x1978   : > { %5649 = vmatpush3.bf16.msra.mxu0 %v6264_v26  ;;  %4837 = vmatprep.mubr.msk.f32.mxu0 %vm6042_vm4, %v6041_v54 }
0x1979   : > { %5650 = vmatprep.subr.bf16.mxu0 %v6040_v16 }
0x197c   : > { %5652 = vmatpush3.bf16.msra.mxu0 %v6274_v31 }
0x197d   : > { %5653 = vmatprep.subr.bf16.mxu0 %v6040_v16 }
0x1980   : > { %5655 = vmatpush3.bf16.msra.mxu0 %v6285_v37 }
0x1981   : > { %5656 = vmatprep.subr.bf16.mxu0 %v6040_v16 }
0x1984   : > { %5658 = vmatpush3.bf16.msra.mxu0 %v6296_v43 }
0x1985   : > { %5659 = vmatprep.subr.bf16.mxu0 %v6040_v16 }
0x1988   : > { %5661 = vmatpush3.bf16.msra.mxu0 %v6307_v49 }
0x1989   : > { %5662 = vmatprep.subr.bf16.mxu0 %v6040_v16 }
0x198c   : > { %5664 = vmatpush3.bf16.msra.mxu0 %v6335_v59 }
0x198d   : > { %5665 = vmatprep.subr.bf16.mxu0 %v6040_v16 }
0x1990   : > { %5667 = vmatpush3.bf16.msra.mxu0 %v6340_v62 }
0x1991   : > { %5668 = vmatprep.subr.bf16.mxu0 %v6040_v16 }
0x1994   : > { %5670 = vmatpush3.bf16.msra.mxu0 %v6348_v1 }
0x1995   : > { %5695 = vmatprep.subr.bf16.mxu0 %v6040_v16 }
0x1a4a   : > { %v2700_v46 = vpop.f32.mrb[26].mxu0 }
0x1a4b   : > { %v2701_v47 = vadd.f32 %v2700_v46, %v6388_v13  ;;  %v4769_v48 = vpop.f32.mrb[27].mxu0 }
0x1a4d   : > { %5880 = vtanh.f32 %v2701_v47 }
0x1a57   : > { %v5881_v51 = vpop.eup %5880 }
0x1a58   : > { %v2780_v53 = vmul.f32 2.0, %v5881_v51  ;;  %v2705_v55 = vmul.f32 0.125, %v5881_v51 }
0x1a5a   : > { %v2706_v56 = vadd.f32 %v2705_v55, %v6867_v30  ;;  %v2781_v57 = vadd.f32 %v2780_v53, %v2779_v52 }
0x1a5c   : > { %4803 = vmatmul.mubr.f32.vlgmr.msra.gmra.mrb[28].mxu1 %v2706_v56 }
0x1a5d   : > { %5673 = vmatpush3.bf16.msra.mxu1 %v6264_v26  ;;  %4872 = vmatprep.mubr.msk.f32.mxu1 %vm6042_vm4, %v6041_v54 }
0x1a5e   : > { %5674 = vmatprep.subr.bf16.mxu1 %v6040_v16 }
0x1a61   : > { %5676 = vmatpush3.bf16.msra.mxu1 %v6274_v31 }
0x1a62   : > { %5677 = vmatprep.subr.bf16.mxu1 %v6040_v16 }
0x1a65   : > { %5679 = vmatpush3.bf16.msra.mxu1 %v6285_v37 }
0x1a66   : > { %5680 = vmatprep.subr.bf16.mxu1 %v6040_v16 }
0x1a69   : > { %5682 = vmatpush3.bf16.msra.mxu1 %v6296_v43 }
0x1a6a   : > { %5683 = vmatprep.subr.bf16.mxu1 %v6040_v16 }
0x1a6d   : > { %5685 = vmatpush3.bf16.msra.mxu1 %v6307_v49 }
0x1a6e   : > { %5686 = vmatprep.subr.bf16.mxu1 %v6040_v16 }
0x1a71   : > { %5688 = vmatpush3.bf16.msra.mxu1 %v6335_v59 }
0x1a72   : > { %5689 = vmatprep.subr.bf16.mxu1 %v6040_v16 }
0x1a75   : > { %5691 = vmatpush3.bf16.msra.mxu1 %v6340_v62 }
0x1a76   : > { %5692 = vmatprep.subr.bf16.mxu1 %v6040_v16 }
0x1a79   : > { %5694 = vmatpush3.bf16.msra.mxu1 %v6348_v1 }
0x1a7a   : > { %5719 = vmatprep.subr.bf16.mxu1 %v6040_v16 }
0x1b2f   : > { %v2773_v58 = vpop.f32.mrb[28].mxu1 }
0x1b30   : > { %v2774_v60 = vadd.f32 %v2773_v58, %v6388_v13  ;;  %v4804_v61 = vpop.f32.mrb[29].mxu1 }
0x1b32   : > { %5882 = vtanh.f32 %v2774_v60 }
0x1b3c   : > { %v5883_v63 = vpop.eup %5882 }
0x1b3d   : > { %v2782_v0 = vadd.f32 %v5883_v63, %v2781_v57 }
0x1b3f   : > { %v2783_v2 = vmul.f32 0.020833334, %v2782_v0 }
0x1b41   : > { %v6950_v3 = vadd.f32 %v2783_v2, %v6867_v30 }
0x1b43   : > { %4838 = vmatmul.mubr.f32.vlgmr.msra.gmra.mrb[28].mxu0 %v6950_v3 }
0x1b44   : > { %5697 = vmatpush3.bf16.msra.mxu0 %v6264_v26  ;;  %4907 = vmatprep.mubr.msk.f32.mxu0 %vm6042_vm4, %v6041_v54 }
0x1b45   : > { %5698 = vmatprep.subr.bf16.mxu0 %v6040_v16 }
0x1b48   : > { %5700 = vmatpush3.bf16.msra.mxu0 %v6274_v31 }
0x1b49   : > { %5701 = vmatprep.subr.bf16.mxu0 %v6040_v16 }
0x1b4c   : > { %5703 = vmatpush3.bf16.msra.mxu0 %v6285_v37 }
0x1b4d   : > { %5704 = vmatprep.subr.bf16.mxu0 %v6040_v16 }
0x1b50   : > { %5706 = vmatpush3.bf16.msra.mxu0 %v6296_v43 }
0x1b51   : > { %5707 = vmatprep.subr.bf16.mxu0 %v6040_v16 }
0x1b54   : > { %5709 = vmatpush3.bf16.msra.mxu0 %v6307_v49 }
0x1b55   : > { %5710 = vmatprep.subr.bf16.mxu0 %v6040_v16 }
0x1b58   : > { %5712 = vmatpush3.bf16.msra.mxu0 %v6335_v59 }
0x1b59   : > { %5713 = vmatprep.subr.bf16.mxu0 %v6040_v16 }
0x1b5c   : > { %5715 = vmatpush3.bf16.msra.mxu0 %v6340_v62 }
0x1b5d   : > { %5716 = vmatprep.subr.bf16.mxu0 %v6040_v16 }
0x1b60   : > { %5718 = vmatpush3.bf16.msra.mxu0 %v6348_v1 }
0x1c16   : > { %v2851_v4 = vpop.f32.mrb[28].mxu0 }
0x1c17   : > { %v2852_v5 = vadd.f32 %v2851_v4, %v6388_v13  ;;  %v4839_v6 = vpop.f32.mrb[29].mxu0 }
0x1c19   : > { %5884 = vtanh.f32 %v2852_v5 }
0x1c23   : > { %v5885_v7 = vpop.eup %5884 }
0x1c24   : > { %v2856_v8 = vmul.f32 0.0625, %v5885_v7 }
0x1c26   : > { %v2857_v9 = vadd.f32 %v2856_v8, %v6950_v3 }
0x1c28   : > { %4873 = vmatmul.mubr.f32.vlgmr.msra.gmra.mrb[30].mxu1 %v2857_v9 }
0x1c29   : > { %5721 = vmatpush3.bf16.msra.mxu1 %v6264_v26  ;;  %4942 = vmatprep.mubr.msk.f32.mxu1 %vm6042_vm4, %v6041_v54 }
0x1c2a   : > { %5722 = vmatprep.subr.bf16.mxu1 %v6040_v16 }
0x1c2d   : > { %5724 = vmatpush3.bf16.msra.mxu1 %v6274_v31 }
0x1c2e   : > { %5725 = vmatprep.subr.bf16.mxu1 %v6040_v16 }
0x1c31   : > { %5727 = vmatpush3.bf16.msra.mxu1 %v6285_v37 }
0x1c32   : > { %5728 = vmatprep.subr.bf16.mxu1 %v6040_v16 }
0x1c35   : > { %5730 = vmatpush3.bf16.msra.mxu1 %v6296_v43 }
0x1c36   : > { %5731 = vmatprep.subr.bf16.mxu1 %v6040_v16 }
0x1c39   : > { %5733 = vmatpush3.bf16.msra.mxu1 %v6307_v49 }
0x1c3a   : > { %5734 = vmatprep.subr.bf16.mxu1 %v6040_v16 }
0x1c3d   : > { %5736 = vmatpush3.bf16.msra.mxu1 %v6335_v59 }
0x1c3e   : > { %5737 = vmatprep.subr.bf16.mxu1 %v6040_v16 }
0x1c41   : > { %5739 = vmatpush3.bf16.msra.mxu1 %v6340_v62 }
0x1c42   : > { %5740 = vmatprep.subr.bf16.mxu1 %v6040_v16 }
0x1c45   : > { %5742 = vmatpush3.bf16.msra.mxu1 %v6348_v1 }
0x1cfb   : > { %v2924_v26 = vpop.f32.mrb[30].mxu1 }
0x1cfc   : > { %v2925_v31 = vadd.f32 %v2924_v26, %v6388_v13  ;;  %v4874_v37 = vpop.f32.mrb[31].mxu1 }
0x1cfe   : > { %5886 = vtanh.f32 %v2925_v31 }
0x1d08   : > { %v5887_v43 = vpop.eup %5886 }
0x1d09   : > { %v2929_v54 = vmul.f32 0.0625, %v5887_v43  ;;  %v3075_v62 = vmul.f32 2.0, %v5887_v43 }
0x1d0b   : > { %v2930_v49 = vadd.f32 %v2929_v54, %v6950_v3  ;;  %v3076_v1 = vadd.f32 %v5885_v7, %v3075_v62 }
0x1d0d   : > { %4908 = vmatmul.mubr.f32.vlgmr.msra.gmra.mrb[30].mxu0 %v2930_v49 }
0x1de0   : > { %v2997_v10 = vpop.f32.mrb[30].mxu0 }
0x1de1   : > { %v2998_v59 = vadd.f32 %v2997_v10, %v6388_v13  ;;  %v4909_v11 = vpop.f32.mrb[31].mxu0 }
0x1de3   : > { %5888 = vtanh.f32 %v2998_v59 }
0x1ded   : > { %v5889_v16 = vpop.eup %5888 }
0x1dee   : > { %v3002_v12 = vmul.f32 0.125, %v5889_v16  ;;  %v3077_v14 = vmul.f32 2.0, %v5889_v16 }
0x1df0   : > { %v3003_v15 = vadd.f32 %v3002_v12, %v6950_v3  ;;  %v3078_v17 = vadd.f32 %v3077_v14, %v3076_v1 }
0x1df2   : > { %4943 = vmatmul.mubr.f32.vlgmr.msra.gmra.mrb[32].mxu1 %v3003_v15 }
0x1df3   : > { %5933 = shalt.err (!%p5930_p7)
}
0x1df4   : > { %s5934_s7 = scalar_lea.hbm %s7084_s10, 128 }
0x1df5   : > { %p5935_p9 = scmp.ne.s32.totalorder %s7084_s10, %s5934_s7  ;;  %p5940_p3 = scmp.lt.u32.totalorder %s5934_s7, %s7084_s10 }
0x1df7   : > { %p5936_p12 = pnand %p5935_p9, %p7110_p10 }
0x1df9   : > { %p5937_p0 = pneg %p5936_p12 }
0x1dfb   : > { %p5942_p2 = pnand %p5940_p3, %p5937_p0 }
0x1dfd   : > { %5945 = shalt.err (!%p5942_p2)
}
0x1dfe   : > { %5748 = dma.vmem_to_hbm [thread:$0]  (%p7110_p10), %s3099_s13, 128, %s7084_s10, [#allocation5]  }
0x1dff   : > { %s3261_s24 = sshll.u32 %s6024_s20, 7  ;;  %s3112_s16 = sshll.u32 %s452_s29, 4  ;;  %s7021_s16 = int_to_ptr.vmem [resolvable:$true] %s3112_s16 }
0x1e00   : > { %s7019_s19 = scalar_lea.hbm %s7085_s11, %s3261_s24  ;;  %s7111_s13 = sand.u32 1, %s6016_s18  }
0x1e01   : > { %s3085_s20 = scalar_lea.sflag [#allocation8], %s7111_s13  ;;  %s5946_s15 = scalar_lea.vmem %s7021_s16, 128 }
0x1e02   : > { %p5947_p4 = scmp.ne.s32.totalorder %s7021_s16, %s5946_s15  ;;  %p7112_p8 = scmp.ne.s32.totalorder %s7101_s28, 0 }
0x1e03   : > { %s6045_s26 = smov [#allocation7]  }
0x1e04   : > { %p5948_p11 = pnand %p5947_p4, %p7112_p8  ;;  %s5950_s14 = sshll.u32 %s6045_s26, 4  ;;  %s5951_s14 = int_to_ptr.vmem [resolvable:$false] %s5950_s14 }
0x1e05   : > { %s5952_s23 = scalar_lea.vmem %s5951_s14, 256  ;;  %p5953_p1 = scmp.lt.s32.totalorder %s7021_s16, %s5951_s14 }
0x1e06   : > { %p5949_p13 = pneg %p5948_p11  ;;  %p5954_p5 = scmp.lt.s32.totalorder %s5952_s23, %s5946_s15 }
0x1e08   : > { %p5955_p6 = por %p5954_p5, %p5953_p1 }
0x1e0a   : > { %p5956_p7 = pnand %p5955_p6, %p5949_p13 }
0x1ec5   : > { %v3070_v18 = vpop.f32.mrb[32].mxu1 }
0x1ec6   : > { %v3071_v19 = vadd.f32 %v3070_v18, %v6388_v13  ;;  %v4944_v20 = vpop.f32.mrb[33].mxu1 }
0x1ec8   : > { %5890 = vtanh.f32 %v3071_v19 }
0x1ed2   : > { %v5891_v21 = vpop.eup %5890 }
0x1ed3   : > { %v3079_v22 = vadd.f32 %v5891_v21, %v3078_v17 }
0x1ed5   : > { %v3080_v23 = vmul.f32 0.020833334, %v3079_v22 }
0x1ed7   : > { %v3081_v24 = vadd.f32 %v3080_v23, %v6950_v3 }
0x1ed9   : > { %3082 = vst [vmem:[#allocation2] sm:$0xff] %v3081_v24  ;;  %3083 = vst [vmem:[%s452_s29] sm:$0xff] %v3081_v24 }
0x1eda   : > { %5959 = shalt.err (!%p5956_p7)
}
0x1edb   : > { %s5960_s25 = scalar_lea.hbm %s7019_s19, 128  ;;  %s5964_s24 = scalar_lea.hbm %s7085_s11, 1024 }
0x1edc   : > { %p5961_p9 = scmp.ne.s32.totalorder %s7019_s19, %s5960_s25  ;;  %p5965_p3 = scmp.lt.u32.totalorder %s7019_s19, %s7085_s11 }
0x1edd   : > { %p5966_p2 = scmp.lt.u32.totalorder %s5964_s24, %s5960_s25  ;;  %p5968_p11 = scmp.lt.u32.totalorder %s5960_s25, %s7019_s19 }
0x1ede   : > { %p5962_p12 = pnand %p5961_p9, %p7112_p8 }
0x1edf   : > { %p5967_p4 = por %p5966_p2, %p5965_p3 }
0x1ee0   : > { %p5963_p0 = pneg %p5962_p12 }
0x1ee1   : > { %p5969_p13 = por %p5968_p11, %p5967_p4 }
0x1ee3   : > { %p5970_p1 = pnand %p5969_p13, %p5963_p0 }
0x1ee5   : > { %5973 = shalt.err (!%p5970_p1)
}
0x1ee6   : > { %5749 = dma.vmem_to_hbm [thread:$0]  (%p7112_p8), %s7021_s16, 128, %s7019_s19, %s3085_s20  }
0x1ee7   : > { %6003 = dma.done.wait (%p7110_p10), [#allocation5], 128  }
0x1ee8   : > { %6005 = vsyncadd (%p7110_p10), [#allocation5], 4294967168 }
0x1ee9 PF: > { %p5765_p5 = scmp.ge.s32.totalorder %s6032_s22, 2  ;;  %s3128_s13 = sand.u32 1, %s6012_s17  }
0x1eea   : > { %p7113_p6 = scmp.ne.s32.totalorder %s7102_s30, 0  ;;  %s3129_s15 = scalar_lea.sflag [#allocation8], %s3128_s13 }
0x1eec   : > { %p5758_p7 = pnand %p5765_p5, %p7113_p6 }
0x1eee   : > { %6007 = dma.done.wait (!%p5758_p7), %s3129_s15, 128  }
0x1eef   : > { %6009 = vsyncadd (!%p5758_p7), %s3129_s15, 4294967168  ;;  %s27_s22 = sadd.s32 1, %s6032_s22   ;;  %s7114_s28 = sld [smem:[#allocation12_spill]] }
0x1ef0   : > { %p24_p9 = scmp.ge.s32.totalorder %s27_s22, 10   ;;  %s7115_s19 = sld [smem:[#allocation15_spill]] }
0x1ef1   : > { %s7116_s20 = sld [smem:[#allocation13_spill]]  ;;  %s7117_s21 = sld [smem:[#allocation14_spill]] }
0x1ef2   : > { %s7118_s17 = smov %s6016_s18  ;;  %26 = sbr.rel (!%p24_p9) target bundleno = 8 (0x8), region = 120 }
0x1ef5   : > { %s7119_s18 = smov %s7114_s28 }
0x1ef9   :  { %3134 = vsyncpa [#allocation4], 1 }
0x1efa   :  { %3136 = vsyncpa [#allocation4 + $0x1], 1 }
0x1efb   :  { %3137 = vsyncpa [#allocation5], 1 }
0x1efc   :  { %3139 = vsyncpa [#allocation5 + $0x1], 1 }
0x1efd   :  { %3140 = vsyncpa [#allocation8], 1 }
0x1efe   :  { %3142 = vsyncpa [#allocation8 + $0x1], 1 }

</bundles_post_ra>
